<compile_context>
chip_gen: v5e
topology: v5e:2x2
jax: 0.10.0
libtpu: 0.0.40
codegen_flags: <defaults>
</compile_context>

<pallas_src>
import functools

import jax
import jax.numpy as jnp
from jax import lax
from jax.experimental import pallas as pl
from jax.experimental.pallas import tpu as pltpu

DEFAULT_MAX_TN = 32768   # max lane tile over the point dimension N
DEFAULT_CHUNK = 512      # in-kernel lane-chunk size
MIN_GRID_STEPS = 4       # keep both v7x TensorCores busy
STATIC_UNROLL_CHUNKS = 8 # unroll the chunk loop statically up to this count


def _pick_tn(n, batch, max_tn, min_steps=MIN_GRID_STEPS):
    """Largest 128-multiple divisor of n <= max_tn, preferring tiles that keep
    batch * (n // tn) >= min_steps (v7x megacore)."""
    divs = [t for t in range(128, min(n, max_tn) + 1, 128) if n % t == 0]
    ok = [t for t in divs if batch * (n // t) >= min_steps]
    return (ok or divs)[-1]


def _pick_chunk(tn, max_chunk=DEFAULT_CHUNK):
    """Largest 128-multiple divisor of tn that is <= max_chunk."""
    c = min(max_chunk, tn)
    while tn % c:
        c -= 128
    return c


# ---------------------------------------------------------------------------
# Fused Pallas kernel: stem matmul + L grouped-conv matmuls + ELU + folded BN
# ---------------------------------------------------------------------------
def _fused_kernel(num_layers, chunk, x_ref, w0_ref, *rest):
    # x_ref    : (1, Cin*K, TN)  input tile, channel-major, f32
    # w0_ref   : (KK, Cin*K)     stem conv weight (bf16 or f32)
    # wl_ref   : (L, KK, KK)     per-layer effective weights (BN+XReshape folded)
    # vecs_ref : (KK, L+3)       [b0 | b_1..b_L | scale | shift], f32
    # o_ref    : (1, KK, TN)     output tile, f32
    if num_layers > 0:
        wl_ref, vecs_ref, o_ref = rest
    else:
        wl_ref = None
        vecs_ref, o_ref = rest

    cdtype = w0_ref.dtype                     # compute dtype for the MXU inputs
    w0 = w0_ref[...]                          # (KK, CinK)
    vecs = vecs_ref[...]                      # (KK, L+3) f32
    b0 = vecs[:, 0:1]
    scale = vecs[:, num_layers + 1:num_layers + 2]
    shift = vecs[:, num_layers + 2:num_layers + 3]
    wls = [wl_ref[i] for i in range(num_layers)] if num_layers else []
    bls = [vecs[:, 1 + i:2 + i] for i in range(num_layers)]

    tn = x_ref.shape[-1]
    n_chunks = tn // chunk

    def elu(t):
        # exp(min(t,0)) - 1 keeps a Mosaic-guaranteed EUP lowering; hidden
        # under the memory stream either way.
        return jnp.where(t > 0, t, jnp.exp(jnp.minimum(t, 0.0)) - 1.0)

    def process(off):
        x = x_ref[0, :, pl.ds(off, chunk)].astype(cdtype)          # (CinK, ch)
        a = elu(jnp.dot(w0, x, preferred_element_type=jnp.float32) + b0)
        for i in range(num_layers):          # static unroll; L is tiny (1-4)
            a = elu(jnp.dot(wls[i], a.astype(cdtype),
                            preferred_element_type=jnp.float32) + bls[i])
        o_ref[0, :, pl.ds(off, chunk)] = (a * scale + shift).astype(o_ref.dtype)

    if n_chunks <= STATIC_UNROLL_CHUNKS:
        # Short fixed trip count: static offsets, fully visible to the LLO
        # scheduler.
        for c in range(n_chunks):
            process(c * chunk)
    else:
        def body(c, carry):
            process(pl.multiple_of(c * chunk, chunk))   # 128-aligned lane start
            return carry
        lax.fori_loop(0, n_chunks, body, 0)


# ---------------------------------------------------------------------------
# Parameter init (deterministic, synthetic)
# ---------------------------------------------------------------------------
def init_params(key, input_dim, num_layers, kernel_size):
    K = kernel_size
    KK = K * K
    keys = jax.random.split(key, 1 + num_layers)

    def conv_bn(k, w_shape):
        kw, kb, kg, kbe, km, kv = jax.random.split(k, 6)
        w = 0.2 * jax.random.normal(kw, w_shape, jnp.float32)
        b = 0.1 * jax.random.normal(kb, (KK,), jnp.float32)
        gamma = 1.0 + 0.1 * jax.random.normal(kg, (KK,), jnp.float32)
        beta = 0.1 * jax.random.normal(kbe, (KK,), jnp.float32)
        mean = 0.1 * jax.random.normal(km, (KK,), jnp.float32)
        var = 0.5 + jax.nn.softplus(jax.random.normal(kv, (KK,), jnp.float32))
        return (w, b, gamma, beta, mean, var)

    # stem: Conv2d(input_dim -> K*K, kernel=(1, K)), weight (KK, C_in, 1, K)
    stem = conv_bn(keys[0], (KK, input_dim, 1, K))
    # layers: Conv2d(K -> K*K, kernel=(K, 1), groups=K), weight (KK, 1, K, 1)
    layers = [conv_bn(keys[1 + i], (KK, 1, K, 1)) for i in range(num_layers)]
    return {"stem": stem, "layers": layers}


# ---------------------------------------------------------------------------
# Forward pass: trace-time weight folding + one fused pallas_call
# ---------------------------------------------------------------------------
def xshared_mlp_forward(points_ckn, params, kernel_size, num_layers,
                        max_tn=DEFAULT_MAX_TN, chunk=DEFAULT_CHUNK,
                        use_bf16=True):
    """points_ckn: (B, C_in, K, N), channel-major producer layout.

    Mathematically identical to the PyTorch module applied to
    points = transpose(points_ckn, (0, 1, 3, 2))   # (B, C_in, N, K)
    """
    B, C_in, K, N = points_ckn.shape
    assert K == kernel_size
    KK = K * K
    eps = 1e-5

    # perm swaps the two base-K digits of a flat (K*K) channel index; exactly
    # the channel permutation produced by XReshape (transpose(1, 2)).
    cidx = jnp.arange(KK)
    perm = (cidx % K) * K + (cidx // K)

    # ---- stem params -------------------------------------------------------
    w_stem, b_stem, g0, be0, m0, v0 = params["stem"]
    w0 = w_stem[:, :, 0, :].reshape(KK, C_in * K)
    scale_prev = g0 / jnp.sqrt(v0 + eps)      # BN of the previous block, to be
    shift_prev = be0 - m0 * scale_prev        # folded into the next weight

    # ---- fold BN + XReshape into each grouped layer's weight/bias ----------
    eye_k = jnp.eye(K, dtype=jnp.float32)
    w_eff, b_eff = [], []
    for i in range(num_layers):
        w_l, b_l, g_l, be_l, m_l, v_l = params["layers"][i]
        wg = w_l[:, 0, :, 0].reshape(K, K, K)                      # [g, j, h]
        # grouped Conv2d(K->KK, kernel (K,1), groups=K) == block-diag matmul
        bd = (wg[:, :, None, :] * eye_k[:, None, :, None]).reshape(KK, KK)
        if i > 0:
            bd = bd[:, perm]                 # fold previous layer's XReshape
        w_eff.append(bd * scale_prev[None, :])   # fold previous BN scale
        b_eff.append(bd @ shift_prev + b_l)      # fold previous BN shift
        scale_prev = g_l / jnp.sqrt(v_l + eps)
        shift_prev = be_l - m_l * scale_prev

    if num_layers > 0:
        # fold the trailing XReshape (output channel permutation) into the
        # last layer's rows and into the final BN affine
        w_eff[-1] = w_eff[-1][perm, :]
        b_eff[-1] = b_eff[-1][perm]
        scale_f, shift_f = scale_prev[perm], shift_prev[perm]
        wl = jnp.stack(w_eff)                                      # (L, KK, KK)
    else:
        scale_f, shift_f = scale_prev, shift_prev
        wl = None

    # one consolidated row-vector stack: [b0 | b_1..b_L | scale | shift]
    vecs = jnp.stack([b_stem] + b_eff + [scale_f, shift_f], axis=1)  # (KK, L+3)

    cdtype = jnp.bfloat16 if use_bf16 else jnp.float32
    w0 = w0.astype(cdtype)
    if num_layers > 0:
        wl = wl.astype(cdtype)

    # ---- input: free view (B, C_in, K, N) -> (B, C_in*K, N); pad N to 128 --
    x2 = points_ckn.reshape(B, C_in * K, N)
    n_pad = -N % 128
    if n_pad:
        x2 = jnp.pad(x2, ((0, 0), (0, 0), (0, n_pad)))
    n_padded = N + n_pad

    tn = _pick_tn(n_padded, B, max_tn)
    chunk = _pick_chunk(tn, chunk)
    grid = (B, n_padded // tn)

    in_specs = [
        pl.BlockSpec((1, C_in * K, tn), lambda bi, ni: (bi, 0, ni)),
        pl.BlockSpec((KK, C_in * K), lambda bi, ni: (0, 0)),
    ]
    inputs = [x2, w0]
    if num_layers > 0:
        in_specs.append(pl.BlockSpec((num_layers, KK, KK),
                                     lambda bi, ni: (0, 0, 0)))
        inputs.append(wl)
    in_specs.append(pl.BlockSpec((KK, num_layers + 3), lambda bi, ni: (0, 0)))
    inputs.append(vecs)

    out = pl.pallas_call(
        functools.partial(_fused_kernel, num_layers, chunk),
        out_shape=jax.ShapeDtypeStruct((B, KK, n_padded), jnp.float32),
        grid_spec=pltpu.PrefetchScalarGridSpec(
            num_scalar_prefetch=0,
            grid=grid,
            in_specs=in_specs,
            out_specs=pl.BlockSpec((1, KK, tn), lambda bi, ni: (bi, 0, ni)),
        ),
        compiler_params=pltpu.CompilerParams(
            dimension_semantics=("parallel", "parallel"),
            vmem_limit_bytes=32 * 1024 * 1024),
    )(*inputs)

    if n_pad:
        out = out[:, :, :N]
    # (B, KK, N) -> (B, K, K, N) is a free view: the final XReshape permutation
    # is already folded into the last layer's weights / final affine.
    return out.reshape(B, K, K, N)


def xshared_mlp_forward_nck(points, params, kernel_size, num_layers, **kw):
    """Module-native (B, C_in, N, K) entry point (compatibility path)."""
    # TODO(synk): for producers that cannot emit the (B, C_in, K, N) layout,
    # fuse this stride-K de-interleave into the kernel (DMA the contiguous
    # (1, C_in, tn*K) slab and unzip on the idle XLU) instead of paying an
    # XLA transpose here.
    return xshared_mlp_forward(jnp.transpose(points, (0, 1, 3, 2)),
                               params, kernel_size, num_layers, **kw)


# ---------------------------------------------------------------------------
# Pure-JAX reference (mirrors PyTorch semantics) for validation
# ---------------------------------------------------------------------------
def xshared_mlp_reference(points, params, kernel_size, num_layers):
    B, C_in, N, K = points.shape
    eps = 1e-5

    def bn(a, g, be, m, v, shape):
        return ((a - m.reshape(shape)) / jnp.sqrt(v.reshape(shape) + eps)
                * g.reshape(shape) + be.reshape(shape))

    w_stem, b_stem, g_s, be_s, m_s, v_s = params["stem"]
    t = (jnp.einsum('bcnk,ock->bon', points, w_stem[:, :, 0, :])
         + b_stem[None, :, None])
    a = jax.nn.elu(t)
    x = bn(a, g_s, be_s, m_s, v_s, (1, -1, 1)).reshape(B, K, K, N)

    for li in range(num_layers):
        w_l, b_l, g_l, be_l, m_l, v_l = params["layers"][li]
        wg = w_l[:, 0, :, 0].reshape(K, K, K)                      # [g, j, h]
        t = jnp.einsum('bghn,gjh->bgjn', x, wg) + b_l.reshape(1, K, K, 1)
        a = jax.nn.elu(t)
        y = bn(a, g_l, be_l, m_l, v_l, (1, K, K, 1))
        x = jnp.transpose(y, (0, 2, 1, 3))                         # XReshape
    return x


if __name__ == "__main__":
    B, C_in, N, K = 2, 4, 4096, 4
    num_layers = 2

    key = jax.random.PRNGKey(0)
    kx, kp = jax.random.split(key)
    # Producer-side channel-major layout (B, C_in, K, N): no HBM transpose in
    # the forward path.  The module-native (B, C_in, N, K) tensor is just a
    # transposed view, used only by the pure-JAX reference below.
    points_ckn = jax.random.normal(kx, (B, C_in, K, N), jnp.float32)
    params = init_params(kp, C_in, num_layers, K)

    points_nck = jnp.transpose(points_ckn, (0, 1, 3, 2))
    ref = xshared_mlp_reference(points_nck, params, K, num_layers)

    # Exact-f32 path: tight check against the reference.
    out_f32 = jax.block_until_ready(
        xshared_mlp_forward(points_ckn, params, K, num_layers, use_bf16=False))
    # bf16-input path (recommended on v6e/v7x): bf16-level tolerance.
    out_bf16 = jax.block_until_ready(
        xshared_mlp_forward(points_ckn, params, K, num_layers, use_bf16=True))

    assert out_f32.shape == (B, K, K, N), out_f32.shape
    err_f32 = float(jnp.max(jnp.abs(out_f32 - ref)))
    err_bf16 = float(jnp.max(jnp.abs(out_bf16 - ref)))
    tol_bf16 = 1e-2 + 2e-2 * float(jnp.max(jnp.abs(ref)))
    if err_f32 < 1e-4 and err_bf16 < tol_bf16:
        print("KERNEL_OK")
    else:
        print("MISMATCH f32_err=%.3e bf16_err=%.3e (bf16 tol %.3e)"
              % (err_f32, err_bf16, tol_bf16))
</pallas_src>

<mosaic_0001>
module attributes {stable_mosaic.version = 11 : i64} {
  func.func @_fused_kernel(%arg0: i32, %arg1: i32, %arg2: memref<1x16x2048xf32, #tpu.memory_space<vmem>>, %arg3: memref<16x16xf32, #tpu.memory_space<vmem>>, %arg4: memref<2x16x16xf32, #tpu.memory_space<vmem>>, %arg5: memref<16x5xf32, #tpu.memory_space<vmem>>, %arg6: memref<1x16x2048xf32, #tpu.memory_space<vmem>>) attributes {dimension_semantics = [#tpu.dimension_semantics<parallel>, #tpu.dimension_semantics<parallel>], iteration_bounds = array<i64: 2, 2>, scalar_prefetch = 0 : i64, scratch_operands = 0 : i64, tpu.core_type = #tpu.core_type<tc>, window_params = [{transform_indices = @transform_0, window_bounds = array<i64: 1, 16, 2048>}, {pipeline_mode = #tpu.pipeline_mode<synchronous>, transform_indices = @transform_1, window_bounds = array<i64: 16, 16>}, {pipeline_mode = #tpu.pipeline_mode<synchronous>, transform_indices = @transform_2, window_bounds = array<i64: 2, 16, 16>}, {pipeline_mode = #tpu.pipeline_mode<synchronous>, transform_indices = @transform_3, window_bounds = array<i64: 16, 5>}, {transform_indices = @transform_4, window_bounds = array<i64: 1, 16, 2048>}]} {
    %c0 = arith.constant 0 : index
    %c0_0 = arith.constant 0 : index
    %0 = vector.load %arg3[%c0, %c0_0] : memref<16x16xf32, #tpu.memory_space<vmem>>, vector<16x16xf32>
    %c0_1 = arith.constant 0 : index
    %c0_2 = arith.constant 0 : index
    %1 = vector.load %arg5[%c0_1, %c0_2] : memref<16x5xf32, #tpu.memory_space<vmem>>, vector<16x5xf32>
    %2 = vector.extract_strided_slice %1 {offsets = [0, 0], sizes = [16, 1], strides = [1, 1]} : vector<16x5xf32> to vector<16x1xf32>
    %3 = vector.extract_strided_slice %1 {offsets = [0, 3], sizes = [16, 1], strides = [1, 1]} : vector<16x5xf32> to vector<16x1xf32>
    %4 = vector.extract_strided_slice %1 {offsets = [0, 4], sizes = [16, 1], strides = [1, 1]} : vector<16x5xf32> to vector<16x1xf32>
    %c0_3 = arith.constant 0 : index
    %c0_4 = arith.constant 0 : index
    %c0_5 = arith.constant 0 : index
    %5 = vector.load %arg4[%c0_3, %c0_4, %c0_5] : memref<2x16x16xf32, #tpu.memory_space<vmem>>, vector<1x16x16xf32>
    %6 = vector.shape_cast %5 : vector<1x16x16xf32> to vector<16x16xf32>
    %c1 = arith.constant 1 : index
    %c0_6 = arith.constant 0 : index
    %c0_7 = arith.constant 0 : index
    %7 = vector.load %arg4[%c1, %c0_6, %c0_7] : memref<2x16x16xf32, #tpu.memory_space<vmem>>, vector<1x16x16xf32>
    %8 = vector.shape_cast %7 : vector<1x16x16xf32> to vector<16x16xf32>
    %9 = vector.extract_strided_slice %1 {offsets = [0, 1], sizes = [16, 1], strides = [1, 1]} : vector<16x5xf32> to vector<16x1xf32>
    %10 = vector.extract_strided_slice %1 {offsets = [0, 2], sizes = [16, 1], strides = [1, 1]} : vector<16x5xf32> to vector<16x1xf32>
    %c0_8 = arith.constant 0 : index
    %c0_9 = arith.constant 0 : index
    %c0_10 = arith.constant 0 : index
    %11 = vector.load %arg2[%c0_8, %c0_9, %c0_10] : memref<1x16x2048xf32, #tpu.memory_space<vmem>>, vector<1x16x512xf32>
    %12 = vector.shape_cast %11 : vector<1x16x512xf32> to vector<16x512xf32>
    %cst = arith.constant dense<0.000000e+00> : vector<16x512xf32>
    %13 = tpu.matmul %0, %12, %cst {dimension_numbers = #tpu.dot_dimension_numbers<[1], [0], [0], [1], [0, 0, 1, 1], [], []>} : vector<16x16xf32>, vector<16x512xf32>, vector<16x512xf32> -> vector<16x512xf32>
    %14 = vector.broadcast %2 : vector<16x1xf32> to vector<16x512xf32>
    %15 = arith.addf %13, %14 : vector<16x512xf32>
    %cst_11 = arith.constant 0.000000e+00 : f32
    %16 = vector.broadcast %cst_11 : f32 to vector<16x512xf32>
    %17 = arith.cmpf ogt, %15, %16 : vector<16x512xf32>
    %cst_12 = arith.constant 0.000000e+00 : f32
    %18 = vector.broadcast %cst_12 : f32 to vector<16x512xf32>
    %19 = arith.minimumf %15, %18 : vector<16x512xf32>
    %20 = math.exp %19 : vector<16x512xf32>
    %cst_13 = arith.constant 1.000000e+00 : f32
    %21 = vector.broadcast %cst_13 : f32 to vector<16x512xf32>
    %22 = arith.subf %20, %21 : vector<16x512xf32>
    %23 = arith.select %17, %15, %22 : vector<16x512xi1>, vector<16x512xf32>
    %cst_14 = arith.constant dense<0.000000e+00> : vector<16x512xf32>
    %24 = tpu.matmul %6, %23, %cst_14 {dimension_numbers = #tpu.dot_dimension_numbers<[1], [0], [0], [1], [0, 0, 1, 1], [], []>} : vector<16x16xf32>, vector<16x512xf32>, vector<16x512xf32> -> vector<16x512xf32>
    %25 = vector.broadcast %9 : vector<16x1xf32> to vector<16x512xf32>
    %26 = arith.addf %24, %25 : vector<16x512xf32>
    %cst_15 = arith.constant 0.000000e+00 : f32
    %27 = vector.broadcast %cst_15 : f32 to vector<16x512xf32>
    %28 = arith.cmpf ogt, %26, %27 : vector<16x512xf32>
    %cst_16 = arith.constant 0.000000e+00 : f32
    %29 = vector.broadcast %cst_16 : f32 to vector<16x512xf32>
    %30 = arith.minimumf %26, %29 : vector<16x512xf32>
    %31 = math.exp %30 : vector<16x512xf32>
    %cst_17 = arith.constant 1.000000e+00 : f32
    %32 = vector.broadcast %cst_17 : f32 to vector<16x512xf32>
    %33 = arith.subf %31, %32 : vector<16x512xf32>
    %34 = arith.select %28, %26, %33 : vector<16x512xi1>, vector<16x512xf32>
    %cst_18 = arith.constant dense<0.000000e+00> : vector<16x512xf32>
    %35 = tpu.matmul %8, %34, %cst_18 {dimension_numbers = #tpu.dot_dimension_numbers<[1], [0], [0], [1], [0, 0, 1, 1], [], []>} : vector<16x16xf32>, vector<16x512xf32>, vector<16x512xf32> -> vector<16x512xf32>
    %36 = vector.broadcast %10 : vector<16x1xf32> to vector<16x512xf32>
    %37 = arith.addf %35, %36 : vector<16x512xf32>
    %cst_19 = arith.constant 0.000000e+00 : f32
    %38 = vector.broadcast %cst_19 : f32 to vector<16x512xf32>
    %39 = arith.cmpf ogt, %37, %38 : vector<16x512xf32>
    %cst_20 = arith.constant 0.000000e+00 : f32
    %40 = vector.broadcast %cst_20 : f32 to vector<16x512xf32>
    %41 = arith.minimumf %37, %40 : vector<16x512xf32>
    %42 = math.exp %41 : vector<16x512xf32>
    %cst_21 = arith.constant 1.000000e+00 : f32
    %43 = vector.broadcast %cst_21 : f32 to vector<16x512xf32>
    %44 = arith.subf %42, %43 : vector<16x512xf32>
    %45 = arith.select %39, %37, %44 : vector<16x512xi1>, vector<16x512xf32>
    %46 = vector.broadcast %3 : vector<16x1xf32> to vector<16x512xf32>
    %47 = arith.mulf %45, %46 : vector<16x512xf32>
    %48 = vector.broadcast %4 : vector<16x1xf32> to vector<16x512xf32>
    %49 = arith.addf %47, %48 : vector<16x512xf32>
    %c0_22 = arith.constant 0 : index
    %c0_23 = arith.constant 0 : index
    %c0_24 = arith.constant 0 : index
    %50 = vector.load %arg6[%c0_22, %c0_23, %c0_24] : memref<1x16x2048xf32, #tpu.memory_space<vmem>>, vector<1x16x512xf32>
    %51 = vector.shape_cast %50 : vector<1x16x512xf32> to vector<16x512xf32>
    %52 = vector.shape_cast %49 : vector<16x512xf32> to vector<1x16x512xf32>
    tpu.vector_store %arg6[%c0_22, %c0_23, %c0_24], %52 {strides = array<i32>} : memref<1x16x2048xf32, #tpu.memory_space<vmem>>, vector<1x16x512xf32>,
    %c0_25 = arith.constant 0 : index
    %c0_26 = arith.constant 0 : index
    %c512 = arith.constant 512 : index
    %53 = vector.load %arg2[%c0_25, %c0_26, %c512] : memref<1x16x2048xf32, #tpu.memory_space<vmem>>, vector<1x16x512xf32>
    %54 = vector.shape_cast %53 : vector<1x16x512xf32> to vector<16x512xf32>
    %cst_27 = arith.constant dense<0.000000e+00> : vector<16x512xf32>
    %55 = tpu.matmul %0, %54, %cst_27 {dimension_numbers = #tpu.dot_dimension_numbers<[1], [0], [0], [1], [0, 0, 1, 1], [], []>} : vector<16x16xf32>, vector<16x512xf32>, vector<16x512xf32> -> vector<16x512xf32>
    %56 = vector.broadcast %2 : vector<16x1xf32> to vector<16x512xf32>
    %57 = arith.addf %55, %56 : vector<16x512xf32>
    %cst_28 = arith.constant 0.000000e+00 : f32
    %58 = vector.broadcast %cst_28 : f32 to vector<16x512xf32>
    %59 = arith.cmpf ogt, %57, %58 : vector<16x512xf32>
    %cst_29 = arith.constant 0.000000e+00 : f32
    %60 = vector.broadcast %cst_29 : f32 to vector<16x512xf32>
    %61 = arith.minimumf %57, %60 : vector<16x512xf32>
    %62 = math.exp %61 : vector<16x512xf32>
    %cst_30 = arith.constant 1.000000e+00 : f32
    %63 = vector.broadcast %cst_30 : f32 to vector<16x512xf32>
    %64 = arith.subf %62, %63 : vector<16x512xf32>
    %65 = arith.select %59, %57, %64 : vector<16x512xi1>, vector<16x512xf32>
    %cst_31 = arith.constant dense<0.000000e+00> : vector<16x512xf32>
    %66 = tpu.matmul %6, %65, %cst_31 {dimension_numbers = #tpu.dot_dimension_numbers<[1], [0], [0], [1], [0, 0, 1, 1], [], []>} : vector<16x16xf32>, vector<16x512xf32>, vector<16x512xf32> -> vector<16x512xf32>
    %67 = vector.broadcast %9 : vector<16x1xf32> to vector<16x512xf32>
    %68 = arith.addf %66, %67 : vector<16x512xf32>
    %cst_32 = arith.constant 0.000000e+00 : f32
    %69 = vector.broadcast %cst_32 : f32 to vector<16x512xf32>
    %70 = arith.cmpf ogt, %68, %69 : vector<16x512xf32>
    %cst_33 = arith.constant 0.000000e+00 : f32
    %71 = vector.broadcast %cst_33 : f32 to vector<16x512xf32>
    %72 = arith.minimumf %68, %71 : vector<16x512xf32>
    %73 = math.exp %72 : vector<16x512xf32>
    %cst_34 = arith.constant 1.000000e+00 : f32
    %74 = vector.broadcast %cst_34 : f32 to vector<16x512xf32>
    %75 = arith.subf %73, %74 : vector<16x512xf32>
    %76 = arith.select %70, %68, %75 : vector<16x512xi1>, vector<16x512xf32>
    %cst_35 = arith.constant dense<0.000000e+00> : vector<16x512xf32>
    %77 = tpu.matmul %8, %76, %cst_35 {dimension_numbers = #tpu.dot_dimension_numbers<[1], [0], [0], [1], [0, 0, 1, 1], [], []>} : vector<16x16xf32>, vector<16x512xf32>, vector<16x512xf32> -> vector<16x512xf32>
    %78 = vector.broadcast %10 : vector<16x1xf32> to vector<16x512xf32>
    %79 = arith.addf %77, %78 : vector<16x512xf32>
    %cst_36 = arith.constant 0.000000e+00 : f32
    %80 = vector.broadcast %cst_36 : f32 to vector<16x512xf32>
    %81 = arith.cmpf ogt, %79, %80 : vector<16x512xf32>
    %cst_37 = arith.constant 0.000000e+00 : f32
    %82 = vector.broadcast %cst_37 : f32 to vector<16x512xf32>
    %83 = arith.minimumf %79, %82 : vector<16x512xf32>
    %84 = math.exp %83 : vector<16x512xf32>
    %cst_38 = arith.constant 1.000000e+00 : f32
    %85 = vector.broadcast %cst_38 : f32 to vector<16x512xf32>
    %86 = arith.subf %84, %85 : vector<16x512xf32>
    %87 = arith.select %81, %79, %86 : vector<16x512xi1>, vector<16x512xf32>
    %88 = vector.broadcast %3 : vector<16x1xf32> to vector<16x512xf32>
    %89 = arith.mulf %87, %88 : vector<16x512xf32>
    %90 = vector.broadcast %4 : vector<16x1xf32> to vector<16x512xf32>
    %91 = arith.addf %89, %90 : vector<16x512xf32>
    %c0_39 = arith.constant 0 : index
    %c0_40 = arith.constant 0 : index
    %c512_41 = arith.constant 512 : index
    %92 = vector.load %arg6[%c0_39, %c0_40, %c512_41] : memref<1x16x2048xf32, #tpu.memory_space<vmem>>, vector<1x16x512xf32>
    %93 = vector.shape_cast %92 : vector<1x16x512xf32> to vector<16x512xf32>
    %94 = vector.shape_cast %91 : vector<16x512xf32> to vector<1x16x512xf32>
    tpu.vector_store %arg6[%c0_39, %c0_40, %c512_41], %94 {strides = array<i32>} : memref<1x16x2048xf32, #tpu.memory_space<vmem>>, vector<1x16x512xf32>,
    %c0_42 = arith.constant 0 : index
    %c0_43 = arith.constant 0 : index
    %c1024 = arith.constant 1024 : index
    %95 = vector.load %arg2[%c0_42, %c0_43, %c1024] : memref<1x16x2048xf32, #tpu.memory_space<vmem>>, vector<1x16x512xf32>
    %96 = vector.shape_cast %95 : vector<1x16x512xf32> to vector<16x512xf32>
    %cst_44 = arith.constant dense<0.000000e+00> : vector<16x512xf32>
    %97 = tpu.matmul %0, %96, %cst_44 {dimension_numbers = #tpu.dot_dimension_numbers<[1], [0], [0], [1], [0, 0, 1, 1], [], []>} : vector<16x16xf32>, vector<16x512xf32>, vector<16x512xf32> -> vector<16x512xf32>
    %98 = vector.broadcast %2 : vector<16x1xf32> to vector<16x512xf32>
    %99 = arith.addf %97, %98 : vector<16x512xf32>
    %cst_45 = arith.constant 0.000000e+00 : f32
    %100 = vector.broadcast %cst_45 : f32 to vector<16x512xf32>
    %101 = arith.cmpf ogt, %99, %100 : vector<16x512xf32>
    %cst_46 = arith.constant 0.000000e+00 : f32
    %102 = vector.broadcast %cst_46 : f32 to vector<16x512xf32>
    %103 = arith.minimumf %99, %102 : vector<16x512xf32>
    %104 = math.exp %103 : vector<16x512xf32>
    %cst_47 = arith.constant 1.000000e+00 : f32
    %105 = vector.broadcast %cst_47 : f32 to vector<16x512xf32>
    %106 = arith.subf %104, %105 : vector<16x512xf32>
    %107 = arith.select %101, %99, %106 : vector<16x512xi1>, vector<16x512xf32>
    %cst_48 = arith.constant dense<0.000000e+00> : vector<16x512xf32>
    %108 = tpu.matmul %6, %107, %cst_48 {dimension_numbers = #tpu.dot_dimension_numbers<[1], [0], [0], [1], [0, 0, 1, 1], [], []>} : vector<16x16xf32>, vector<16x512xf32>, vector<16x512xf32> -> vector<16x512xf32>
    %109 = vector.broadcast %9 : vector<16x1xf32> to vector<16x512xf32>
    %110 = arith.addf %108, %109 : vector<16x512xf32>
    %cst_49 = arith.constant 0.000000e+00 : f32
    %111 = vector.broadcast %cst_49 : f32 to vector<16x512xf32>
    %112 = arith.cmpf ogt, %110, %111 : vector<16x512xf32>
    %cst_50 = arith.constant 0.000000e+00 : f32
    %113 = vector.broadcast %cst_50 : f32 to vector<16x512xf32>
    %114 = arith.minimumf %110, %113 : vector<16x512xf32>
    %115 = math.exp %114 : vector<16x512xf32>
    %cst_51 = arith.constant 1.000000e+00 : f32
    %116 = vector.broadcast %cst_51 : f32 to vector<16x512xf32>
    %117 = arith.subf %115, %116 : vector<16x512xf32>
    %118 = arith.select %112, %110, %117 : vector<16x512xi1>, vector<16x512xf32>
    %cst_52 = arith.constant dense<0.000000e+00> : vector<16x512xf32>
    %119 = tpu.matmul %8, %118, %cst_52 {dimension_numbers = #tpu.dot_dimension_numbers<[1], [0], [0], [1], [0, 0, 1, 1], [], []>} : vector<16x16xf32>, vector<16x512xf32>, vector<16x512xf32> -> vector<16x512xf32>
    %120 = vector.broadcast %10 : vector<16x1xf32> to vector<16x512xf32>
    %121 = arith.addf %119, %120 : vector<16x512xf32>
    %cst_53 = arith.constant 0.000000e+00 : f32
    %122 = vector.broadcast %cst_53 : f32 to vector<16x512xf32>
    %123 = arith.cmpf ogt, %121, %122 : vector<16x512xf32>
    %cst_54 = arith.constant 0.000000e+00 : f32
    %124 = vector.broadcast %cst_54 : f32 to vector<16x512xf32>
    %125 = arith.minimumf %121, %124 : vector<16x512xf32>
    %126 = math.exp %125 : vector<16x512xf32>
    %cst_55 = arith.constant 1.000000e+00 : f32
    %127 = vector.broadcast %cst_55 : f32 to vector<16x512xf32>
    %128 = arith.subf %126, %127 : vector<16x512xf32>
    %129 = arith.select %123, %121, %128 : vector<16x512xi1>, vector<16x512xf32>
    %130 = vector.broadcast %3 : vector<16x1xf32> to vector<16x512xf32>
    %131 = arith.mulf %129, %130 : vector<16x512xf32>
    %132 = vector.broadcast %4 : vector<16x1xf32> to vector<16x512xf32>
    %133 = arith.addf %131, %132 : vector<16x512xf32>
    %c0_56 = arith.constant 0 : index
    %c0_57 = arith.constant 0 : index
    %c1024_58 = arith.constant 1024 : index
    %134 = vector.load %arg6[%c0_56, %c0_57, %c1024_58] : memref<1x16x2048xf32, #tpu.memory_space<vmem>>, vector<1x16x512xf32>
    %135 = vector.shape_cast %134 : vector<1x16x512xf32> to vector<16x512xf32>
    %136 = vector.shape_cast %133 : vector<16x512xf32> to vector<1x16x512xf32>
    tpu.vector_store %arg6[%c0_56, %c0_57, %c1024_58], %136 {strides = array<i32>} : memref<1x16x2048xf32, #tpu.memory_space<vmem>>, vector<1x16x512xf32>,
    %c0_59 = arith.constant 0 : index
    %c0_60 = arith.constant 0 : index
    %c1536 = arith.constant 1536 : index
    %137 = vector.load %arg2[%c0_59, %c0_60, %c1536] : memref<1x16x2048xf32, #tpu.memory_space<vmem>>, vector<1x16x512xf32>
    %138 = vector.shape_cast %137 : vector<1x16x512xf32> to vector<16x512xf32>
    %cst_61 = arith.constant dense<0.000000e+00> : vector<16x512xf32>
    %139 = tpu.matmul %0, %138, %cst_61 {dimension_numbers = #tpu.dot_dimension_numbers<[1], [0], [0], [1], [0, 0, 1, 1], [], []>} : vector<16x16xf32>, vector<16x512xf32>, vector<16x512xf32> -> vector<16x512xf32>
    %140 = vector.broadcast %2 : vector<16x1xf32> to vector<16x512xf32>
    %141 = arith.addf %139, %140 : vector<16x512xf32>
    %cst_62 = arith.constant 0.000000e+00 : f32
    %142 = vector.broadcast %cst_62 : f32 to vector<16x512xf32>
    %143 = arith.cmpf ogt, %141, %142 : vector<16x512xf32>
    %cst_63 = arith.constant 0.000000e+00 : f32
    %144 = vector.broadcast %cst_63 : f32 to vector<16x512xf32>
    %145 = arith.minimumf %141, %144 : vector<16x512xf32>
    %146 = math.exp %145 : vector<16x512xf32>
    %cst_64 = arith.constant 1.000000e+00 : f32
    %147 = vector.broadcast %cst_64 : f32 to vector<16x512xf32>
    %148 = arith.subf %146, %147 : vector<16x512xf32>
    %149 = arith.select %143, %141, %148 : vector<16x512xi1>, vector<16x512xf32>
    %cst_65 = arith.constant dense<0.000000e+00> : vector<16x512xf32>
    %150 = tpu.matmul %6, %149, %cst_65 {dimension_numbers = #tpu.dot_dimension_numbers<[1], [0], [0], [1], [0, 0, 1, 1], [], []>} : vector<16x16xf32>, vector<16x512xf32>, vector<16x512xf32> -> vector<16x512xf32>
    %151 = vector.broadcast %9 : vector<16x1xf32> to vector<16x512xf32>
    %152 = arith.addf %150, %151 : vector<16x512xf32>
    %cst_66 = arith.constant 0.000000e+00 : f32
    %153 = vector.broadcast %cst_66 : f32 to vector<16x512xf32>
    %154 = arith.cmpf ogt, %152, %153 : vector<16x512xf32>
    %cst_67 = arith.constant 0.000000e+00 : f32
    %155 = vector.broadcast %cst_67 : f32 to vector<16x512xf32>
    %156 = arith.minimumf %152, %155 : vector<16x512xf32>
    %157 = math.exp %156 : vector<16x512xf32>
    %cst_68 = arith.constant 1.000000e+00 : f32
    %158 = vector.broadcast %cst_68 : f32 to vector<16x512xf32>
    %159 = arith.subf %157, %158 : vector<16x512xf32>
    %160 = arith.select %154, %152, %159 : vector<16x512xi1>, vector<16x512xf32>
    %cst_69 = arith.constant dense<0.000000e+00> : vector<16x512xf32>
    %161 = tpu.matmul %8, %160, %cst_69 {dimension_numbers = #tpu.dot_dimension_numbers<[1], [0], [0], [1], [0, 0, 1, 1], [], []>} : vector<16x16xf32>, vector<16x512xf32>, vector<16x512xf32> -> vector<16x512xf32>
    %162 = vector.broadcast %10 : vector<16x1xf32> to vector<16x512xf32>
    %163 = arith.addf %161, %162 : vector<16x512xf32>
    %cst_70 = arith.constant 0.000000e+00 : f32
    %164 = vector.broadcast %cst_70 : f32 to vector<16x512xf32>
    %165 = arith.cmpf ogt, %163, %164 : vector<16x512xf32>
    %cst_71 = arith.constant 0.000000e+00 : f32
    %166 = vector.broadcast %cst_71 : f32 to vector<16x512xf32>
    %167 = arith.minimumf %163, %166 : vector<16x512xf32>
    %168 = math.exp %167 : vector<16x512xf32>
    %cst_72 = arith.constant 1.000000e+00 : f32
    %169 = vector.broadcast %cst_72 : f32 to vector<16x512xf32>
    %170 = arith.subf %168, %169 : vector<16x512xf32>
    %171 = arith.select %165, %163, %170 : vector<16x512xi1>, vector<16x512xf32>
    %172 = vector.broadcast %3 : vector<16x1xf32> to vector<16x512xf32>
    %173 = arith.mulf %171, %172 : vector<16x512xf32>
    %174 = vector.broadcast %4 : vector<16x1xf32> to vector<16x512xf32>
    %175 = arith.addf %173, %174 : vector<16x512xf32>
    %c0_73 = arith.constant 0 : index
    %c0_74 = arith.constant 0 : index
    %c1536_75 = arith.constant 1536 : index
    %176 = vector.load %arg6[%c0_73, %c0_74, %c1536_75] : memref<1x16x2048xf32, #tpu.memory_space<vmem>>, vector<1x16x512xf32>
    %177 = vector.shape_cast %176 : vector<1x16x512xf32> to vector<16x512xf32>
    %178 = vector.shape_cast %175 : vector<16x512xf32> to vector<1x16x512xf32>
    tpu.vector_store %arg6[%c0_73, %c0_74, %c1536_75], %178 {strides = array<i32>} : memref<1x16x2048xf32, #tpu.memory_space<vmem>>, vector<1x16x512xf32>,
    return
  }
  func.func @transform_0(%arg0: i32, %arg1: i32) -> (i32, i32, i32) {
    %c0_i32 = arith.constant 0 : i32
    %c0_i32_0 = arith.constant 0 : i32
    return %arg0, %c0_i32, %arg1 : i32, i32, i32
  }
  func.func @transform_1(%arg0: i32, %arg1: i32) -> (i32, i32) {
    %c0_i32 = arith.constant 0 : i32
    %c0_i32_0 = arith.constant 0 : i32
    %c0_i32_1 = arith.constant 0 : i32
    return %c0_i32, %c0_i32_0 : i32, i32
  }
  func.func @transform_2(%arg0: i32, %arg1: i32) -> (i32, i32, i32) {
    %c0_i32 = arith.constant 0 : i32
    %c0_i32_0 = arith.constant 0 : i32
    %c0_i32_1 = arith.constant 0 : i32
    %c0_i32_2 = arith.constant 0 : i32
    return %c0_i32, %c0_i32_0, %c0_i32_1 : i32, i32, i32
  }
  func.func @transform_3(%arg0: i32, %arg1: i32) -> (i32, i32) {
    %c0_i32 = arith.constant 0 : i32
    %c0_i32_0 = arith.constant 0 : i32
    %c0_i32_1 = arith.constant 0 : i32
    return %c0_i32, %c0_i32_0 : i32, i32
  }
  func.func @transform_4(%arg0: i32, %arg1: i32) -> (i32, i32, i32) {
    %c0_i32 = arith.constant 0 : i32
    %c0_i32_0 = arith.constant 0 : i32
    return %arg0, %c0_i32, %arg1 : i32, i32, i32
  }
}

</mosaic_0001>

<bundles_post_ra>
// kernel: tpu_custom_call.1
= control target key start
LH: loop header
LB: loop body
LE: loop exit
PB: predicated region body
PF: predicated region fallthrough
CT: control target
= control target key end

     0   :  { %s3748_s0 = inlined_call_operand.hbm [shape: f32[2,16,4096], index: 0, kind: input, shape index: {}]   ;;  %s3749_s1 = inlined_call_operand.vmem [shape: f32[16,16], index: 1, kind: input, shape index: {}]   ;;  %s3750_s2 = inlined_call_operand.hbm [shape: f32[2,16,16], index: 2, kind: input, shape index: {}]   ;;  %s3751_s3 = inlined_call_operand.vmem [shape: f32[16,5], index: 3, kind: input, shape index: {}]   ;;  %s3752_s4 = inlined_call_operand.hbm [shape: f32[2,16,4096], index: 4, kind: output, shape index: {}]  }
   0x1   :  { %3762 = sst [smem:[#allocation17_spill]] %s3750_s2 }
   0x2   :  { %3763 = sst [smem:[#allocation18_spill]] %s3752_s4 }
   0x3   :  { %9 = vsyncpa [#allocation3], 0 }
   0x4   :  { %11 = vsyncpa [#allocation3 + $0x1], 0 }
   0x5   :  { %12 = vsyncpa [#allocation6], 0 }
   0x6   :  { %13 = vsyncpa [#allocation4], 0 }
   0x7   :  { %15 = vsyncpa [#allocation4 + $0x1], 0  ;;  %s2971_s15 = smov 0   ;;  %s2973_s16 = smov 0  }
   0x8   :  { %s2975_s17 = smov 0   ;;  %s2977_s18 = smov 0  }
   0x9   :  { %s2979_s19 = smov 0   ;;  %s2981_s20 = smov 0  }
   0xa   :  { %s2983_s21 = smov 0   ;;  %s2985_s22 = smov 0  }
   0xb LB: > { %3764 = sst [smem:[#allocation11_spill]] %s2903_s15  ;;  %s2251_s23 = sadd.s32 4294967295, %s2931_s22   ;;  %s2931_s22 = sphi %s2985_s22, %s21_s22   ;;  %s2927_s21 = sphi %s2983_s21, %s3790_s21   ;;  %s2923_s20 = sphi %s2981_s20, %s3784_s20   ;;  %s2919_s19 = sphi %s2979_s19, %s3789_s19   ;;  %s2915_s18 = sphi %s2977_s18, %s3783_s18   ;;  %s2911_s17 = sphi %s2975_s17, %s3788_s17   ;;  %s2907_s16 = sphi %s2973_s16, %s3787_s16   ;;  %s2903_s15 = sphi %s2971_s15, %s3786_s15  }
   0xc   : > { %3765 = sst [smem:[#allocation12_spill]] %s2923_s20  ;;  %s2252_s24 = sadd.s32 4294967294, %s2931_s22  }
   0xd   : > { %p55_p0 = scmp.ne.s32.totalorder %s2907_s16, %s2903_s15  ;;  %p3015_p1 = scmp.eq.s32.totalorder %s2251_s23, 0 }
   0xe   : > { %p3019_p2 = scmp.eq.s32.totalorder %s2251_s23, 3  ;;  %p150_p3 = scmp.eq.s32.totalorder %s2252_s24, 3 }
   0xf   : > { %p3025_p4 = por %p3015_p1, %p55_p0  ;;  %p2253_p5 = scmp.ge.s32.totalorder %s2931_s22, 1 }
  0x10   : > { %p3030_p6 = por %p150_p3, %p55_p0  ;;  %p157_p7 = scmp.lt.s32.totalorder %s2931_s22, 5 }
  0x11   : > { %s3771_s2 = sld [smem:[#allocation17_spill]]  ;;  %s2933_s7 = smov [#allocation5]  }
  0x12   : > { %s3769_s28 = scalar_select %p3030_p6, 1, 0 }
  0x13   : > { %p3038_p8 = pnand %p2253_p5, %p157_p7  ;;  %s173_s8 = sshll.u32 %s2933_s7, 4  ;;  %s174_s8 = int_to_ptr.vmem [resolvable:$true] %s173_s8 }
  0x14   : > { %3770 = sst [smem:[#allocation13_spill]] %s3769_s28  ;;  %s3753_s9 = smov 128  }
  0x15   : > { %p2470_p9 = pneg %p3038_p8  ;;  %s2935_s10 = smov 8  }
  0x16   : > { %s30_s11 = sadd.s32 1, %s2923_s20  ;;  %s33_s12 = sadd.s32 1, %s2927_s21 }
  0x17   : > { %s171_s5 = sshll.u32 %s3771_s2, 4  ;;  %p2471_p10 = pnand %p2470_p9, %p3015_p1  ;;  %s172_s5 = int_to_ptr.hbm [resolvable:$true] %s171_s5 }
  0x18   : > { %p31_p11 = scmp.ge.s32.totalorder %s30_s11, 2  ;;  %s42_s13 = sadd.s32 1, %s2911_s17 }
  0x19   : > { %2473 = dma.hbm_to_vmem [thread:$0]  (!%p2471_p10), %s172_s5, 512, %s174_s8, [#allocation6], %s3753_s9, %s3753_s9, %s2935_s10  }
  0x1a   : > { %p49_p12 = scmp.ne.s32.totalorder %s2911_s17, %s2907_s16  ;;  %s3792_s11 = smov (%p31_p11, %s30_s11), 0 }
  0x1b   : > { %3773 = sst [smem:[#allocation14_spill]] %s3792_s11  ;;  %s3794_s12 = smov (!%p31_p11, %s33_s12), %s2927_s21 }
  0x1c   : > { %s38_s14 = ssub.s32 %s2923_s20, %s3792_s11  ;;  %p50_p13 = scmp.eq.s32.totalorder %s2931_s22, 0 }
  0x1d   : > { %p35_p0 = scmp.ge.s32.totalorder %s3794_s12, 2  ;;  %p3061_p3 = por %p3019_p2, %p49_p12 }
  0x1e   : > { %p3065_p5 = por %p50_p13, %p49_p12  ;;  %p2483_p7 = scmp.lt.s32.totalorder %s2931_s22, 4 }
  0x1f   : > { %s3774_s23 = scalar_select %p3061_p3, 1, 0 }
  0x20   : > { %s3796_s12 = smov (%p35_p0, %s3794_s12), 0  ;;  %s190_s29 = sand.u32 1, %s2911_s17  }
  0x21   : > { %3775 = sst [smem:[#allocation15_spill]] %s3774_s23  ;;  %s2257_s30 = sshll.u32 %s2923_s20, 4 }
  0x22   : > { %3777 = sst [smem:[#allocation16_spill]] %s3796_s12  ;;  %s37_s5 = ssub.s32 %s2927_s21, %s3796_s12 }
  0x23   : > { %s39_s7 = sor.u32 %s38_s14, %s37_s5  ;;  %s2256_s8 = sshll.u32 %s190_s29, 8 }
  0x24   : > { %p40_p9 = scmp.eq.s32.totalorder %s39_s7, 0  ;;  %s2258_s26 = sshll.u32 %s2927_s21, 6 }
  0x25   : > { %s194_s10 = scalar_lea.vmem [#allocation2], %s2256_s8  ;;  %s199_s11 = sadd.s32 %s2258_s26, %s2257_s30 }
  0x26   : > { %s204_s9 = sshll.u32 %s194_s10, 4  ;;  %s2259_s28 = sshll.u32 %s199_s11, 3  ;;  %s205_s9 = int_to_ptr.vmem [resolvable:$true] %s204_s9 }
  0x27   : > { %s3078_s2 = scalar_select %p40_p9, %s2911_s17, %s42_s13  }
  0x28   : > { %p2475_p2 = pnand %p2483_p7, %p3065_p5  ;;  %s201_s4 = scalar_lea.hbm %s3748_s0, %s2259_s28 }
  0x29   : > { %s202_s20 = sshll.u32 %s201_s4, 4  ;;  %s191_s14 = scalar_lea.sflag [#allocation3], %s190_s29  ;;  %s203_s20 = int_to_ptr.hbm [resolvable:$true] %s202_s20 }
  0x2a   : > { %s2936_s5 = smov 4096   ;;  %s2937_s7 = smov 2048  }
  0x2b   : > { %s3778_s12 = smov 128   ;;  %216 = sbr.rel (%p3038_p8) target bundleno = 1543 (0x607), region = 36 }
  0x2c   : > { %2477 = dma.hbm_to_vmem [thread:$0]  (!%p2475_p2), %s203_s20, 4096, %s205_s9, %s191_s14, %s2936_s5, %s2937_s7, %s3778_s12  }
  0x2d   : > { %s3091_s11 = sand.u32 (!%p3038_p8), 1, %s2907_s16  }
  0x2e   : > { %s2261_s13 = sshll.u32 (!%p3038_p8), %s3091_s11, 8  ;;  %s219_s15 = scalar_lea.sflag (!%p3038_p8), [#allocation3], %s3091_s11 }
  0x2f   : > { %s3097_s4 = scalar_lea.vmem (!%p3038_p8), [#allocation2], %s2261_s13 }
  0x30   : > { %2890 = dma.done.wait (%p3025_p4), %s219_s15, 4096  }
  0x31   : > { %2892 = vsyncadd (%p3025_p4), %s219_s15, 4294963200 }
  0x32   : > { %2894 = dma.done.wait (%p3015_p1), [#allocation6], 512  }
  0x33   : > { %2896 = vsyncadd (%p3015_p1), [#allocation6], 4294966784  ;;  %v2938_v0 = vmov 0   ;;  %v268_v1 = vld [vmem:[%s3097_s4 + $0x80] sm:$0xff]  ;;  %v269_v2 = vld [vmem:[%s3097_s4 + $0x88] sm:$0xff]  ;;  %vm282_vm0 = vcmask 130048  }
  0x34   : > { %2563 = vset.pattern.permute.xlu0 %v2938_v0  ;;  %v270_v3 = vld [vmem:[%s3097_s4 + $0x90] sm:$0xff]  ;;  %303 = vmatpush.msra.mxu0 %v268_v1  ;;  %v271_v4 = vld [vmem:[%s3097_s4 + $0x98] sm:$0xff]  ;;  %v264_v5 = vld [vmem:[%s3097_s4] sm:$0xff]  ;;  %v2939_v15 = vmov 1   ;;  %s3327_s24 = scalar_lea.vmem [#allocation7], %s2261_s13  ;;  %s2457_s10 = sshll.u32 %s2915_s18, 4 }
  0x35   : > { %326 = vmatpush.msra.mxu1 %v269_v2  ;;  %v265_v6 = vld [vmem:[%s3097_s4 + $0x8] sm:$0xff]  ;;  %349 = vmatpush.msra.mxu2 %v270_v3  ;;  %v266_v7 = vld [vmem:[%s3097_s4 + $0x10] sm:$0xff]  ;;  %v267_v8 = vld [vmem:[%s3097_s4 + $0x18] sm:$0xff]  ;;  %s2458_s14 = sshll.u32 %s2919_s19, 6  ;;  %s3779_s13 = sld [smem:[#allocation18_spill]] }
  0x36   : > { %372 = vmatpush.msra.mxu3 %v271_v4  ;;  %v3118_v9 = vld [vmem:[%s3749_s1] sm:$0xff]  ;;  %304 = vmatpush.msra.mxu0 %v264_v5  ;;  %v3123_v10 = vld [vmem:[%s3751_s3 + $0x8] sm:$0xff]  ;;  %s2145_s5 = sadd.s32 %s2458_s14, %s2457_s10  ;;  %s2134_s27 = scalar_lea.sflag [#allocation4], %s3091_s11 }
  0x37   : > { %327 = vmatpush.msra.mxu1 %v265_v6  ;;  %350 = vmatpush.msra.mxu2 %v266_v7  ;;  %v3137_v11 = vld [vmem:[%s3749_s1 + $0x8] sm:$0xff]  ;;  %v3142_v12 = vld [vmem:[%s3751_s3] sm:$0xff]  ;;  %s2459_s18 = sshll.u32 %s2145_s5, 3 }
  0x38   : > { %373 = vmatpush.msra.mxu3 %v267_v8  ;;  %2264 = vmatmul.msk.f32.vlgmr.msra.gmra.mxu0 %vm282_vm0, %v3118_v9  ;;  %v3173_v59 = vld [vmem:[#allocation5] sm:$0xff] }
  0x39   : > { %2266 = vmatmul.msk.f32.vlgmr.msra.gmra.mxu1 %vm282_vm0, %v3118_v9  ;;  %2268 = vmatmul.msk.f32.vlgmr.msra.gmra.mxu2 %vm282_vm0, %v3118_v9 }
  0x3a   : > { %2270 = vmatmul.msk.f32.vlgmr.msra.gmra.mxu3 %vm282_vm0, %v3118_v9  ;;  %279 = vperm.xlu0 %2563, %v3123_v10  }
  0x3b   : > { %2564 = vset.pattern.permute.xlu1 %v2939_v15  ;;  %v3183_v15 = vld [vmem:[#allocation5 + $0x8] sm:$0xff]  ;;  %s2147_s15 = scalar_lea.hbm %s3779_s13, %s2459_s18  ;;  %s2849_s23 = scalar_lea.hbm %s3779_s13, 1024 }
  0x3c   : > { %434 = vperm.xlu1 %2564, %v3123_v10   ;;  %s2150_s25 = sshll.u32 %s2147_s15, 4  ;;  %s2151_s25 = int_to_ptr.hbm [resolvable:$true] %s2150_s25 }
  0x3d   : > { %s2843_s28 = sshra.s32 %s2151_s25, 4  ;;  %s2844_s28 = int_to_ptr.hbm [resolvable:$true] %s2843_s28 }
  0x3e   : > { %s2845_s6 = scalar_lea.hbm %s2844_s28, 256  ;;  %p2850_p10 = scmp.lt.s32.totalorder %s2844_s28, %s3779_s13 }
  0x3f   : > { %p2846_p1 = scmp.ne.s32.totalorder %s2844_s28, %s2845_s6  ;;  %p2851_p11 = scmp.lt.s32.totalorder %s2849_s23, %s2845_s6 }
  0x40   : > { %2265 = vmatmul.msk.f32.gmra.mxu0 %vm282_vm0, %v3137_v11 }
  0x41   : > { %2267 = vmatmul.msk.f32.gmra.mxu1 %vm282_vm0, %v3137_v11  ;;  %2269 = vmatmul.msk.f32.gmra.mxu2 %vm282_vm0, %v3137_v11  ;;  %p2847_p4 = pnand %p2846_p1, %p3061_p3  ;;  %p2852_p12 = por %p2851_p11, %p2850_p10 }
  0x42   : > { %2271 = vmatmul.msk.f32.gmra.mxu3 %vm282_vm0, %v3137_v11  ;;  %274 = vperm.xlu0 %2563, %v3142_v12  }
  0x43   : > { %p2848_p8 = pneg %p2847_p4 }
  0x44   : > { %430 = vperm.xlu1 %2564, %v3142_v12  }
  0x45   : > { %p2853_p13 = pnand %p2852_p12, %p2848_p8 }
  0xac   : > { %v3153_v13 = vpop.permute.xlu0 %279 }
  0xb4   : > { %v3155_v14 = vpop.permute.xlu0 %274 }
  0xb5   : > { %v306_v16 = vpop.f32.mrf.mxu0 }
  0xb6   : > { %v329_v17 = vpop.f32.mrf.mxu1  ;;  %v307_v18 = vadd.f32 %v306_v16, %v3155_v14  ;;  %v3197_v16 = vpop.permute.xlu1 %434 }
  0xb7   : > { %v330_v19 = vadd.f32 %v329_v17, %v3155_v14 }
  0xb8   : > { %v389_v20 = vmin.f32 %v307_v18, 0.0  ;;  %vm381_vm3 = vcmp.gt.f32.partialorder %v307_v18, 0.0 }
  0xb9   : > { %v390_v21 = vmin.f32 %v330_v19, 0.0  ;;  %vm382_vm4 = vcmp.gt.f32.partialorder %v330_v19, 0.0 }
  0xba   : > { %v397_v30 = vmul.f32 1.442695, %v389_v20 }
  0xbb   : > { %v399_v31 = vmul.f32 1.442695, %v390_v21 }
  0xbc   : > { %v352_v22 = vpop.f32.mrf.mxu2  ;;  %2571 = vpow2.f32 %v397_v30 }
  0xbd   : > { %v375_v23 = vpop.f32.mrf.mxu3  ;;  %v3161_v24 = vadd.f32 %v352_v22, %v3155_v14  ;;  %v309_v25 = vpop.f32.mrf.mxu0  ;;  %2573 = vpow2.f32 %v399_v31 }
  0xbe   : > { %v332_v26 = vpop.f32.mrf.mxu1  ;;  %v3165_v27 = vadd.f32 %v375_v23, %v3155_v14  ;;  %v310_v28 = vadd.f32 %v309_v25, %v3153_v13  ;;  %v3199_v17 = vpop.permute.xlu1 %430 }
  0xbf   : > { %v333_v29 = vadd.f32 %v332_v26, %v3153_v13  ;;  %v391_v34 = vmin.f32 %v3161_v24, 0.0  ;;  %vm383_vm7 = vcmp.gt.f32.partialorder %v3161_v24, 0.0 }
  0xc0   : > { %v393_v32 = vmin.f32 %v310_v28, 0.0  ;;  %v392_v35 = vmin.f32 %v3165_v27, 0.0  ;;  %vm385_vm1 = vcmp.gt.f32.partialorder %v310_v28, 0.0  ;;  %vm384_vm8 = vcmp.gt.f32.partialorder %v3165_v27, 0.0 }
  0xc1   : > { %v394_v33 = vmin.f32 %v333_v29, 0.0  ;;  %v401_v40 = vmul.f32 1.442695, %v391_v34  ;;  %vm386_vm2 = vcmp.gt.f32.partialorder %v333_v29, 0.0 }
  0xc2   : > { %v405_v36 = vmul.f32 1.442695, %v393_v32  ;;  %v403_v43 = vmul.f32 1.442695, %v392_v35  ;;  %v2572_v46 = vpop.eup %2571 }
  0xc3   : > { %v407_v37 = vmul.f32 1.442695, %v394_v33  ;;  %v2574_v49 = vpop.eup %2573  ;;  %v2272_v53 = vadd.f32 -1.0, %v2572_v46 }
  0xc4   : > { %v355_v38 = vpop.f32.mrf.mxu2  ;;  %2575 = vpow2.f32 %v405_v36  ;;  %v2273_v55 = vadd.f32 -1.0, %v2574_v49 }
  0xc5   : > { %v378_v39 = vpop.f32.mrf.mxu3  ;;  %v356_v41 = vadd.f32 %v355_v38, %v3153_v13  ;;  %2577 = vpow2.f32 %v407_v37  ;;  %v421_v61 = vsel %vm381_vm3, %v307_v18, %v2272_v53 }
  0xc6   : > { %v379_v42 = vadd.f32 %v378_v39, %v3153_v13  ;;  %2579 = vpow2.f32 %v401_v40  ;;  %v422_v63 = vsel %vm382_vm4, %v330_v19, %v2273_v55 }
  0xc7   : > { %v395_v44 = vmin.f32 %v356_v41, 0.0  ;;  %2581 = vpow2.f32 %v403_v43  ;;  %vm387_vm5 = vcmp.gt.f32.partialorder %v356_v41, 0.0 }
  0xc8   : > { %v396_v45 = vmin.f32 %v379_v42, 0.0  ;;  %vm388_vm6 = vcmp.gt.f32.partialorder %v379_v42, 0.0 }
  0xc9   : > { %v409_v47 = vmul.f32 1.442695, %v395_v44 }
  0xca   : > { %v411_v48 = vmul.f32 1.442695, %v396_v45  ;;  %v2576_v50 = vpop.eup %2575 }
  0xcb   : > { %2583 = vpow2.f32 %v409_v47  ;;  %v2578_v51 = vpop.eup %2577  ;;  %v2276_v52 = vadd.f32 -1.0, %v2576_v50 }
  0xcc   : > { %2585 = vpow2.f32 %v411_v48  ;;  %v2277_v54 = vadd.f32 -1.0, %v2578_v51  ;;  %v2580_v57 = vpop.eup %2579 }
  0xcd   : > { %v425_v56 = vsel %vm385_vm1, %v310_v28, %v2276_v52  ;;  %v2582_v60 = vpop.eup %2581  ;;  %v2274_v2 = vadd.f32 -1.0, %v2580_v57 }
  0xce   : > { %457 = vmatpush.msrb.mxu0 %v425_v56  ;;  %v426_v58 = vsel %vm386_vm2, %v333_v29, %v2277_v54  ;;  %v2275_v4 = vadd.f32 -1.0, %v2582_v60  ;;  %v3215_v60 = vld [vmem:[#allocation5 + $0x10] sm:$0xff] }
  0xcf   : > { %480 = vmatpush.msrb.mxu1 %v426_v58  ;;  %v423_v7 = vsel %vm383_vm7, %v3161_v24, %v2274_v2  ;;  %v777_v2 = vld [vmem:[%s3097_s4 + $0x20] sm:$0xff] }
  0xd0   : > { %458 = vmatpush.msrb.mxu0 %v421_v61  ;;  %v424_v8 = vsel %vm384_vm8, %v3165_v27, %v2275_v4 }
  0xd1   : > { %v2584_v62 = vpop.eup %2583  ;;  %481 = vmatpush.msrb.mxu1 %v422_v63  ;;  %2280 = vmatmul.msk.f32.vlgmr.msrb.gmra.mxu0 %vm282_vm0, %v3173_v59  ;;  %v781_v63 = vld [vmem:[%s3097_s4 + $0xa0] sm:$0xff] }
  0xd2   : > { %v2586_v0 = vpop.eup %2585  ;;  %v2278_v1 = vadd.f32 -1.0, %v2584_v62  ;;  %2282 = vmatmul.msk.f32.vlgmr.msrb.gmra.mxu1 %vm282_vm0, %v3173_v59 }
  0xd3   : > { %v2279_v3 = vadd.f32 -1.0, %v2586_v0 }
  0xd4   : > { %v427_v5 = vsel %vm387_vm5, %v356_v41, %v2278_v1  ;;  %v782_v1 = vld [vmem:[%s3097_s4 + $0xa8] sm:$0xff] }
  0xd5   : > { %503 = vmatpush.msrb.mxu2 %v427_v5  ;;  %v428_v6 = vsel %vm388_vm6, %v379_v42, %v2279_v3  ;;  %v778_v3 = vld [vmem:[%s3097_s4 + $0x28] sm:$0xff] }
  0xd6   : > { %526 = vmatpush.msrb.mxu3 %v428_v6 }
  0xd7   : > { %504 = vmatpush.msrb.mxu2 %v423_v7  ;;  %v3226_v7 = vld [vmem:[#allocation5 + $0x18] sm:$0xff] }
  0xd8   : > { %527 = vmatpush.msrb.mxu3 %v424_v8  ;;  %2284 = vmatmul.msk.f32.vlgmr.msrb.gmra.mxu2 %vm282_vm0, %v3173_v59 }
  0xd9   : > { %2286 = vmatmul.msk.f32.vlgmr.msrb.gmra.mxu3 %vm282_vm0, %v3173_v59  ;;  %2281 = vmatmul.msk.f32.gmra.mxu0 %vm282_vm0, %v3183_v15 }
  0xda   : > { %2283 = vmatmul.msk.f32.gmra.mxu1 %vm282_vm0, %v3183_v15 }
  0xe0   : > { %2285 = vmatmul.msk.f32.gmra.mxu2 %vm282_vm0, %v3183_v15 }
  0xe1   : > { %2287 = vmatmul.msk.f32.gmra.mxu3 %vm282_vm0, %v3183_v15 }
 0x14e   : > { %v460_v18 = vpop.f32.mrf.mxu0 }
 0x14f   : > { %v483_v19 = vpop.f32.mrf.mxu1  ;;  %v461_v20 = vadd.f32 %v460_v18, %v3199_v17 }
 0x150   : > { %v484_v21 = vadd.f32 %v483_v19, %v3199_v17 }
 0x151   : > { %v543_v22 = vmin.f32 %v461_v20, 0.0  ;;  %vm535_vm9 = vcmp.gt.f32.partialorder %v461_v20, 0.0 }
 0x152   : > { %v544_v23 = vmin.f32 %v484_v21, 0.0  ;;  %vm536_vm12 = vcmp.gt.f32.partialorder %v484_v21, 0.0 }
 0x153   : > { %v551_v27 = vmul.f32 1.442695, %v543_v22 }
 0x154   : > { %v553_v29 = vmul.f32 1.442695, %v544_v23 }
 0x155   : > { %2587 = vpow2.f32 %v551_v27  ;;  %v783_v27 = vld [vmem:[%s3097_s4 + $0xb0] sm:$0xff] }
 0x156   : > { %v463_v24 = vpop.f32.mrf.mxu0  ;;  %2589 = vpow2.f32 %v553_v29  ;;  %v784_v29 = vld [vmem:[%s3097_s4 + $0xb8] sm:$0xff] }
 0x157   : > { %v464_v25 = vadd.f32 %v463_v24, %v3197_v16  ;;  %v486_v26 = vpop.f32.mrf.mxu1  ;;  %v2941_v24 = vmov 2  }
 0x158   : > { %v487_v28 = vadd.f32 %v486_v26, %v3197_v16  ;;  %2565 = vset.pattern.permute.xlu2 %v2941_v24 }
 0x159   : > { %v547_v30 = vmin.f32 %v464_v25, 0.0  ;;  %vm539_vm10 = vcmp.gt.f32.partialorder %v464_v25, 0.0  ;;  %584 = vperm.xlu2 %2565, %v3142_v12  }
 0x15a   : > { %v548_v31 = vmin.f32 %v487_v28, 0.0  ;;  %vm540_vm11 = vcmp.gt.f32.partialorder %v487_v28, 0.0 }
 0x15b   : > { %v506_v32 = vpop.f32.mrf.mxu2  ;;  %v559_v33 = vmul.f32 1.442695, %v547_v30  ;;  %v2588_v40 = vpop.eup %2587  ;;  %v779_v30 = vld [vmem:[%s3097_s4 + $0x30] sm:$0xff] }
 0x15c   : > { %v3206_v34 = vadd.f32 %v506_v32, %v3199_v17  ;;  %v529_v35 = vpop.f32.mrf.mxu3  ;;  %v561_v36 = vmul.f32 1.442695, %v548_v31  ;;  %v2590_v41 = vpop.eup %2589  ;;  %v2288_v51 = vadd.f32 -1.0, %v2588_v40  ;;  %v780_v31 = vld [vmem:[%s3097_s4 + $0x38] sm:$0xff]  ;;  %v2942_v32 = vmov 4  }
 0x15d   : > { %v3209_v37 = vadd.f32 %v529_v35, %v3199_v17  ;;  %2591 = vpow2.f32 %v559_v33  ;;  %v2289_v54 = vadd.f32 -1.0, %v2590_v41 }
 0x15e   : > { %2593 = vpow2.f32 %v561_v36  ;;  %v545_v38 = vmin.f32 %v3206_v34, 0.0  ;;  %v575_v62 = vsel %vm535_vm9, %v461_v20, %v2288_v51  ;;  %v2940_v20 = vmov 3  }
 0x15f   : > { %v546_v39 = vmin.f32 %v3209_v37, 0.0  ;;  %v576_v0 = vsel %vm536_vm12, %v484_v21, %v2289_v54  ;;  %2566 = vset.pattern.permute.xlu0 %v2940_v20  ;;  %2567 = vset.pattern.permute.xlu1 %v2940_v20  ;;  %vm537_vm15 = vcmp.gt.f32.partialorder %v3206_v34, 0.0  ;;  %vm538_vm1 = vcmp.gt.f32.partialorder %v3209_v37, 0.0 }
 0x160   : > { %v555_v44 = vmul.f32 1.442695, %v545_v38  ;;  %738 = vperm.xlu0 %2566, %v3142_v12   ;;  %742 = vperm.xlu1 %2567, %v3123_v10  }
 0x161   : > { %v557_v49 = vmul.f32 1.442695, %v546_v39  ;;  %588 = vperm.xlu2 %2565, %v3123_v10  }
 0x162   : > { %2595 = vpow2.f32 %v555_v44 }
 0x163   : > { %v509_v42 = vpop.f32.mrf.mxu2  ;;  %v2592_v43 = vpop.eup %2591  ;;  %2597 = vpow2.f32 %v557_v49 }
 0x164   : > { %v510_v45 = vadd.f32 %v509_v42, %v3197_v16  ;;  %v532_v46 = vpop.f32.mrf.mxu3  ;;  %v2594_v47 = vpop.eup %2593  ;;  %v2292_v48 = vadd.f32 -1.0, %v2592_v43 }
 0x165   : > { %v533_v50 = vadd.f32 %v532_v46, %v3197_v16  ;;  %v2293_v52 = vadd.f32 -1.0, %v2594_v47 }
 0x166   : > { %v549_v53 = vmin.f32 %v510_v45, 0.0  ;;  %v579_v56 = vsel %vm539_vm10, %v464_v25, %v2292_v48  ;;  %vm541_vm13 = vcmp.gt.f32.partialorder %v510_v45, 0.0 }
 0x167   : > { %v550_v55 = vmin.f32 %v533_v50, 0.0  ;;  %611 = vmatpush.msra.mxu0 %v579_v56  ;;  %v580_v58 = vsel %vm540_vm11, %v487_v28, %v2293_v52  ;;  %vm542_vm14 = vcmp.gt.f32.partialorder %v533_v50, 0.0 }
 0x168   : > { %v563_v57 = vmul.f32 1.442695, %v549_v53  ;;  %634 = vmatpush.msra.mxu1 %v580_v58  ;;  %v2596_v4 = vpop.eup %2595  ;;  %2569 = vset.pattern.permute.xlu1 %v2942_v32 }
 0x169   : > { %v565_v61 = vmul.f32 1.442695, %v550_v55  ;;  %612 = vmatpush.msra.mxu0 %v575_v62  ;;  %v2598_v5 = vpop.eup %2597  ;;  %v2290_v19 = vadd.f32 -1.0, %v2596_v4  ;;  %758 = vperm.xlu1 %2569, %v3123_v10  }
 0x16a   : > { %2599 = vpow2.f32 %v563_v57  ;;  %635 = vmatpush.msra.mxu1 %v576_v0  ;;  %2296 = vmatmul.msk.f32.vlgmr.msra.gmra.mxu0 %vm282_vm0, %v3215_v60  ;;  %v2291_v22 = vadd.f32 -1.0, %v2598_v5 }
 0x16b   : > { %2601 = vpow2.f32 %v565_v61  ;;  %2298 = vmatmul.msk.f32.vlgmr.msra.gmra.mxu1 %vm282_vm0, %v3215_v60  ;;  %799 = vmatpush.msrb.mxu0 %v781_v63  ;;  %v577_v26 = vsel %vm537_vm15, %v3206_v34, %v2290_v19 }
 0x16c   : > { %822 = vmatpush.msrb.mxu1 %v782_v1  ;;  %v578_v28 = vsel %vm538_vm1, %v3209_v37, %v2291_v22  ;;  %2570 = vset.pattern.permute.xlu0 %v2942_v32 }
 0x16d   : > { %800 = vmatpush.msrb.mxu0 %v777_v2  ;;  %2568 = vset.pattern.permute.xlu2 %v2942_v32 }
 0x16e   : > { %823 = vmatpush.msrb.mxu1 %v778_v3  ;;  %754 = vperm.xlu2 %2568, %v3142_v12  }
 0x170   : > { %v2600_v6 = vpop.eup %2599 }
 0x171   : > { %v2602_v8 = vpop.eup %2601  ;;  %v2294_v18 = vadd.f32 -1.0, %v2600_v6 }
 0x172   : > { %v2295_v21 = vadd.f32 -1.0, %v2602_v8  ;;  %2297 = vmatmul.msk.f32.gmra.mxu0 %vm282_vm0, %v3226_v7 }
 0x173   : > { %v581_v23 = vsel %vm541_vm13, %v510_v45, %v2294_v18  ;;  %2299 = vmatmul.msk.f32.gmra.mxu1 %vm282_vm0, %v3226_v7 }
 0x174   : > { %657 = vmatpush.msra.mxu2 %v581_v23  ;;  %v582_v25 = vsel %vm542_vm14, %v533_v50, %v2295_v21 }
 0x175   : > { %680 = vmatpush.msra.mxu3 %v582_v25 }
 0x176   : > { %658 = vmatpush.msra.mxu2 %v577_v26 }
 0x177   : > { %681 = vmatpush.msra.mxu3 %v578_v28  ;;  %2300 = vmatmul.msk.f32.vlgmr.msra.gmra.mxu2 %vm282_vm0, %v3215_v60 }
 0x178   : > { %2302 = vmatmul.msk.f32.vlgmr.msra.gmra.mxu3 %vm282_vm0, %v3215_v60  ;;  %845 = vmatpush.msrb.mxu2 %v783_v27 }
 0x179   : > { %868 = vmatpush.msrb.mxu3 %v784_v29 }
 0x17a   : > { %846 = vmatpush.msrb.mxu2 %v779_v30  ;;  %2312 = vmatmul.msk.f32.vlgmr.msrb.gmra.mxu0 %vm282_vm0, %v3118_v9 }
 0x17b   : > { %869 = vmatpush.msrb.mxu3 %v780_v31  ;;  %2314 = vmatmul.msk.f32.vlgmr.msrb.gmra.mxu1 %vm282_vm0, %v3118_v9 }
 0x17f   : > { %2301 = vmatmul.msk.f32.gmra.mxu2 %vm282_vm0, %v3226_v7 }
 0x180   : > { %2303 = vmatmul.msk.f32.gmra.mxu3 %vm282_vm0, %v3226_v7 }
 0x182   : > { %2313 = vmatmul.msk.f32.gmra.mxu0 %vm282_vm0, %v3137_v11 }
 0x183   : > { %2315 = vmatmul.msk.f32.gmra.mxu1 %vm282_vm0, %v3137_v11 }
 0x187   : > { %2316 = vmatmul.msk.f32.vlgmr.msrb.gmra.mxu2 %vm282_vm0, %v3118_v9 }
 0x188   : > { %2318 = vmatmul.msk.f32.vlgmr.msrb.gmra.mxu3 %vm282_vm0, %v3118_v9 }
 0x18f   : > { %2317 = vmatmul.msk.f32.gmra.mxu2 %vm282_vm0, %v3137_v11 }
 0x190   : > { %2319 = vmatmul.msk.f32.gmra.mxu3 %vm282_vm0, %v3137_v11 }
 0x1b3   : > { %v3270_v36 = vpop.permute.xlu2 %584 }
 0x1bb   : > { %v3289_v52 = vpop.permute.xlu2 %588 }
 0x1c8   : > { %v3320_v31 = vpop.permute.xlu2 %754 }
 0x1d2   : > { %v3309_v22 = vpop.permute.xlu0 %738 }
 0x1e7   : > { %v614_v10 = vpop.f32.mrf.mxu0 }
 0x1e8   : > { %v637_v33 = vpop.f32.mrf.mxu1  ;;  %v615_v12 = vadd.f32 %v614_v10, %v3270_v36 }
 0x1e9   : > { %v638_v37 = vadd.f32 %v637_v33, %v3270_v36 }
 0x1ea   : > { %v697_v38 = vmin.f32 %v615_v12, 0.0  ;;  %vm689_vm2 = vcmp.gt.f32.partialorder %v615_v12, 0.0 }
 0x1eb   : > { %v698_v39 = vmin.f32 %v638_v37, 0.0  ;;  %vm690_vm3 = vcmp.gt.f32.partialorder %v638_v37, 0.0 }
 0x1ec   : > { %v705_v40 = vmul.f32 1.442695, %v697_v38 }
 0x1ed   : > { %v707_v41 = vmul.f32 1.442695, %v698_v39 }
 0x1ee   : > { %2603 = vpow2.f32 %v705_v40 }
 0x1ef   : > { %v617_v34 = vpop.f32.mrf.mxu0  ;;  %2605 = vpow2.f32 %v707_v41 }
 0x1f0   : > { %v640_v35 = vpop.f32.mrf.mxu1  ;;  %v3293_v54 = vadd.f32 %v617_v34, %v3289_v52 }
 0x1f1   : > { %v3296_v0 = vadd.f32 %v640_v35, %v3289_v52 }
 0x1f2   : > { %v701_v18 = vmin.f32 %v3293_v54, 0.0  ;;  %vm693_vm8 = vcmp.gt.f32.partialorder %v3293_v54, 0.0 }
 0x1f3   : > { %v702_v27 = vmin.f32 %v3296_v0, 0.0  ;;  %vm694_vm11 = vcmp.gt.f32.partialorder %v3296_v0, 0.0 }
 0x1f4   : > { %v2604_v55 = vpop.eup %2603 }
 0x1f5   : > { %v2606_v58 = vpop.eup %2605  ;;  %v2304_v63 = vadd.f32 -1.0, %v2604_v55 }
 0x1f6   : > { %v2305_v4 = vadd.f32 -1.0, %v2606_v58 }
 0x1f7   : > { %v802_v42 = vpop.f32.mrf.mxu0  ;;  %v729_v8 = vsel %vm689_vm2, %v615_v12, %v2304_v63 }
 0x1f8   : > { %v3275_v43 = vadd.f32 %v802_v42, %v3155_v14  ;;  %v825_v44 = vpop.f32.mrf.mxu1  ;;  %v730_v23 = vsel %vm690_vm3, %v638_v37, %v2305_v4  ;;  %v745_v26 = vmul.f32 %v3309_v22, %v729_v8  ;;  %v713_v37 = vmul.f32 1.442695, %v701_v18 }
 0x1f9   : > { %v3278_v11 = vadd.f32 %v825_v44, %v3155_v14  ;;  %v746_v30 = vmul.f32 %v3309_v22, %v730_v23  ;;  %v3332_v44 = vpop.permute.xlu1 %742 }
 0x1fa   : > { %v660_v45 = vpop.f32.mrf.mxu2  ;;  %v885_v46 = vmin.f32 %v3275_v43, 0.0  ;;  %v761_v33 = vadd.f32 %v3320_v31, %v745_v26  ;;  %vm877_vm6 = vcmp.gt.f32.partialorder %v3275_v43, 0.0 }
 0x1fb   : > { %v3282_v47 = vadd.f32 %v660_v45, %v3270_v36  ;;  %v683_v48 = vpop.f32.mrf.mxu3  ;;  %v886_v50 = vmin.f32 %v3278_v11, 0.0  ;;  %v762_v12 = vadd.f32 %v3320_v31, %v746_v30  ;;  %v715_v45 = vmul.f32 1.442695, %v702_v27 }
 0x1fc   : > { %v3285_v49 = vadd.f32 %v683_v48, %v3270_v36  ;;  %v893_v56 = vmul.f32 1.442695, %v885_v46  ;;  %769 = vst [vmem:[%s3327_s24] sm:$0xff] %v761_v33  ;;  %vm878_vm7 = vcmp.gt.f32.partialorder %v3278_v11, 0.0 }
 0x1fd   : > { %v699_v51 = vmin.f32 %v3282_v47, 0.0  ;;  %v895_v1 = vmul.f32 1.442695, %v886_v50  ;;  %vm691_vm4 = vcmp.gt.f32.partialorder %v3282_v47, 0.0  ;;  %770 = vst [vmem:[%s3327_s24 + $0x8] sm:$0xff] %v762_v12 }
 0x1fe   : > { %v700_v53 = vmin.f32 %v3285_v49, 0.0  ;;  %vm692_vm5 = vcmp.gt.f32.partialorder %v3285_v49, 0.0 }
 0x1ff   : > { %v709_v57 = vmul.f32 1.442695, %v699_v51  ;;  %v805_v62 = vpop.f32.mrf.mxu0 }
 0x200   : > { %v711_v61 = vmul.f32 1.442695, %v700_v53  ;;  %v3299_v2 = vadd.f32 %v805_v62, %v3153_v13  ;;  %v828_v3 = vpop.f32.mrf.mxu1 }
 0x201   : > { %2607 = vpow2.f32 %v709_v57  ;;  %v3302_v5 = vadd.f32 %v828_v3, %v3153_v13  ;;  %v3370_v12 = vpop.permute.xlu1 %758 }
 0x202   : > { %2609 = vpow2.f32 %v711_v61  ;;  %v663_v6 = vpop.f32.mrf.mxu2  ;;  %v889_v19 = vmin.f32 %v3299_v2, 0.0  ;;  %vm881_vm9 = vcmp.gt.f32.partialorder %v3299_v2, 0.0 }
 0x203   : > { %2611 = vpow2.f32 %v893_v56  ;;  %v3307_v20 = vadd.f32 %v663_v6, %v3289_v52  ;;  %v686_v21 = vpop.f32.mrf.mxu3  ;;  %v890_v24 = vmin.f32 %v3302_v5, 0.0  ;;  %vm882_vm10 = vcmp.gt.f32.partialorder %v3302_v5, 0.0 }
 0x204   : > { %v3314_v25 = vadd.f32 %v686_v21, %v3289_v52  ;;  %2613 = vpow2.f32 %v895_v1  ;;  %v901_v28 = vmul.f32 1.442695, %v889_v19 }
 0x205   : > { %v703_v29 = vmin.f32 %v3307_v20, 0.0  ;;  %v903_v32 = vmul.f32 1.442695, %v890_v24  ;;  %vm695_vm12 = vcmp.gt.f32.partialorder %v3307_v20, 0.0 }
 0x206   : > { %v704_v10 = vmin.f32 %v3314_v25, 0.0  ;;  %2615 = vpow2.f32 %v901_v28  ;;  %vm696_vm13 = vcmp.gt.f32.partialorder %v3314_v25, 0.0 }
 0x207   : > { %v2608_v34 = vpop.eup %2607  ;;  %v717_v35 = vmul.f32 1.442695, %v703_v29  ;;  %2617 = vpow2.f32 %v903_v32 }
 0x208   : > { %v2610_v38 = vpop.eup %2609  ;;  %v2306_v39 = vadd.f32 -1.0, %v2608_v34  ;;  %v719_v40 = vmul.f32 1.442695, %v704_v10 }
 0x209   : > { %v2612_v41 = vpop.eup %2611  ;;  %v2307_v42 = vadd.f32 -1.0, %v2610_v38  ;;  %2619 = vpow2.f32 %v717_v35 }
 0x20a   : > { %v731_v46 = vsel %vm691_vm4, %v3282_v47, %v2306_v39  ;;  %2621 = vpow2.f32 %v719_v40  ;;  %v848_v48 = vpop.f32.mrf.mxu2  ;;  %v2614_v50 = vpop.eup %2613 }
 0x20b   : > { %v732_v51 = vsel %vm692_vm5, %v3285_v49, %v2307_v42  ;;  %v747_v53 = vmul.f32 %v3309_v22, %v731_v46  ;;  %v3339_v55 = vadd.f32 %v848_v48, %v3155_v14  ;;  %v871_v56 = vpop.f32.mrf.mxu3  ;;  %2623 = vpow2.f32 %v713_v37 }
 0x20c   : > { %v748_v57 = vmul.f32 %v3309_v22, %v732_v51  ;;  %v3343_v58 = vadd.f32 %v871_v56, %v3155_v14  ;;  %2625 = vpow2.f32 %v715_v45  ;;  %v2616_v47 = vpop.eup %2615  ;;  %v2320_v49 = vadd.f32 -1.0, %v2612_v41 }
 0x20d   : > { %v763_v61 = vadd.f32 %v3320_v31, %v747_v53  ;;  %v2618_v62 = vpop.eup %2617  ;;  %v2324_v63 = vadd.f32 -1.0, %v2616_v47  ;;  %v887_v1 = vmin.f32 %v3339_v55, 0.0  ;;  %v2321_v4 = vadd.f32 -1.0, %v2614_v50 }
 0x20e   : > { %v764_v3 = vadd.f32 %v3320_v31, %v748_v57  ;;  %v2325_v8 = vadd.f32 -1.0, %v2618_v62  ;;  %v888_v21 = vmin.f32 %v3343_v58, 0.0  ;;  %v917_v28 = vsel %vm877_vm6, %v3275_v43, %v2320_v49 }
 0x20f   : > { %v2620_v6 = vpop.eup %2619  ;;  %771 = vst [vmem:[%s3327_s24 + $0x10] sm:$0xff] %v763_v61  ;;  %v921_v23 = vsel %vm881_vm9, %v3299_v2, %v2324_v63  ;;  %v897_v32 = vmul.f32 1.442695, %v887_v1  ;;  %v918_v2 = vsel %vm878_vm7, %v3278_v11, %v2321_v4  ;;  %vm879_vm1 = vcmp.gt.f32.partialorder %v3339_v55, 0.0 }
 0x210   : > { %v2622_v18 = vpop.eup %2621  ;;  %v2310_v19 = vadd.f32 -1.0, %v2620_v6  ;;  %772 = vst [vmem:[%s3327_s24 + $0x18] sm:$0xff] %v764_v3  ;;  %939 = vmatpush.msra.mxu0 %v921_v23  ;;  %v922_v27 = vsel %vm882_vm10, %v3302_v5, %v2325_v8  ;;  %vm880_vm2 = vcmp.gt.f32.partialorder %v3343_v58, 0.0 }
 0x211   : > { %v2624_v24 = vpop.eup %2623  ;;  %v2311_v26 = vadd.f32 -1.0, %v2622_v18  ;;  %962 = vmatpush.msra.mxu1 %v922_v27  ;;  %2627 = vpow2.f32 %v897_v32 }
 0x212   : > { %v2626_v29 = vpop.eup %2625  ;;  %v735_v30 = vsel %vm695_vm12, %v3307_v20, %v2310_v19  ;;  %v851_v10 = vpop.f32.mrf.mxu2  ;;  %v2308_v33 = vadd.f32 -1.0, %v2624_v24  ;;  %940 = vmatpush.msra.mxu0 %v917_v28  ;;  %v899_v20 = vmul.f32 1.442695, %v888_v21 }
 0x213   : > { %v736_v34 = vsel %vm696_vm13, %v3314_v25, %v2311_v26  ;;  %v852_v35 = vadd.f32 %v851_v10, %v3153_v13  ;;  %v874_v5 = vpop.f32.mrf.mxu3  ;;  %v2309_v43 = vadd.f32 -1.0, %v2626_v29  ;;  %v751_v37 = vmul.f32 %v3332_v44, %v735_v30  ;;  %963 = vmatpush.msra.mxu1 %v918_v2  ;;  %2328 = vmatmul.msk.f32.vlgmr.msra.gmra.mxu0 %vm282_vm0, %v3173_v59 }
 0x214   : > { %v875_v38 = vadd.f32 %v874_v5, %v3153_v13  ;;  %v733_v11 = vsel %vm693_vm8, %v3293_v54, %v2308_v33  ;;  %v752_v39 = vmul.f32 %v3332_v44, %v736_v34  ;;  %2330 = vmatmul.msk.f32.vlgmr.msra.gmra.mxu1 %vm282_vm0, %v3173_v59  ;;  %2629 = vpow2.f32 %v899_v20 }
 0x215   : > { %v891_v25 = vmin.f32 %v852_v35, 0.0  ;;  %v734_v40 = vsel %vm694_vm11, %v3296_v0, %v2309_v43  ;;  %v749_v41 = vmul.f32 %v3332_v44, %v733_v11  ;;  %v767_v45 = vadd.f32 %v3370_v12, %v751_v37 }
 0x216   : > { %v892_v54 = vmin.f32 %v875_v38, 0.0  ;;  %v750_v42 = vmul.f32 %v3332_v44, %v734_v40  ;;  %v768_v50 = vadd.f32 %v3370_v12, %v752_v39  ;;  %vm883_vm14 = vcmp.gt.f32.partialorder %v852_v35, 0.0 }
 0x217   : > { %v905_v46 = vmul.f32 1.442695, %v891_v25  ;;  %v765_v48 = vadd.f32 %v3370_v12, %v749_v41  ;;  %775 = vst [vmem:[%s3327_s24 + $0x90] sm:$0xff] %v767_v45  ;;  %v2628_v53 = vpop.eup %2627  ;;  %vm884_vm15 = vcmp.gt.f32.partialorder %v875_v38, 0.0  ;;  %v1234_v45 = vld [vmem:[%s3097_s4 + $0xc8] sm:$0xff] }
 0x218   : > { %v907_v0 = vmul.f32 1.442695, %v892_v54  ;;  %v766_v51 = vadd.f32 %v3370_v12, %v750_v42  ;;  %776 = vst [vmem:[%s3327_s24 + $0x98] sm:$0xff] %v768_v50  ;;  %v2322_v49 = vadd.f32 -1.0, %v2628_v53  ;;  %v1233_v54 = vld [vmem:[%s3097_s4 + $0xc0] sm:$0xff]  ;;  %v1230_v50 = vld [vmem:[%s3097_s4 + $0x48] sm:$0xff] }
 0x219   : > { %2631 = vpow2.f32 %v905_v46  ;;  %773 = vst [vmem:[%s3327_s24 + $0x80] sm:$0xff] %v765_v48  ;;  %v1229_v46 = vld [vmem:[%s3097_s4 + $0x40] sm:$0xff] }
 0x21a   : > { %2633 = vpow2.f32 %v907_v0  ;;  %774 = vst [vmem:[%s3327_s24 + $0x88] sm:$0xff] %v766_v51  ;;  %v2630_v56 = vpop.eup %2629  ;;  %v919_v4 = vsel %vm879_vm1, %v3339_v55, %v2322_v49 }
 0x21b   : > { %2329 = vmatmul.msk.f32.gmra.mxu0 %vm282_vm0, %v3183_v15  ;;  %v2323_v63 = vadd.f32 -1.0, %v2630_v56 }
 0x21c   : > { %2331 = vmatmul.msk.f32.gmra.mxu1 %vm282_vm0, %v3183_v15 }
 0x21d   : > { %v920_v6 = vsel %vm880_vm2, %v3343_v58, %v2323_v63 }
 0x21f   : > { %v2632_v57 = vpop.eup %2631 }
 0x220   : > { %v2634_v47 = vpop.eup %2633  ;;  %v2326_v61 = vadd.f32 -1.0, %v2632_v57 }
 0x221   : > { %v2327_v62 = vadd.f32 -1.0, %v2634_v47 }
 0x222   : > { %v923_v1 = vsel %vm883_vm14, %v852_v35, %v2326_v61 }
 0x223   : > { %985 = vmatpush.msra.mxu2 %v923_v1  ;;  %v924_v3 = vsel %vm884_vm15, %v875_v38, %v2327_v62 }
 0x224   : > { %1008 = vmatpush.msra.mxu3 %v924_v3 }
 0x225   : > { %986 = vmatpush.msra.mxu2 %v919_v4 }
 0x226   : > { %1009 = vmatpush.msra.mxu3 %v920_v6  ;;  %2332 = vmatmul.msk.f32.vlgmr.msra.gmra.mxu2 %vm282_vm0, %v3173_v59 }
 0x227   : > { %2334 = vmatmul.msk.f32.vlgmr.msra.gmra.mxu3 %vm282_vm0, %v3173_v59 }
 0x22e   : > { %2333 = vmatmul.msk.f32.gmra.mxu2 %vm282_vm0, %v3183_v15 }
 0x22f   : > { %2335 = vmatmul.msk.f32.gmra.mxu3 %vm282_vm0, %v3183_v15 }
 0x290   : > { %v942_v8 = vpop.f32.mrf.mxu0 }
 0x291   : > { %v943_v55 = vadd.f32 %v942_v8, %v3199_v17  ;;  %v965_v18 = vpop.f32.mrf.mxu1  ;;  %v3436_v8 = vld [vmem:[%s3749_s1] sm:$0xff] }
 0x292   : > { %v966_v19 = vadd.f32 %v965_v18, %v3199_v17 }
 0x293   : > { %v1025_v58 = vmin.f32 %v943_v55, 0.0  ;;  %vm1017_vm5 = vcmp.gt.f32.partialorder %v943_v55, 0.0 }
 0x294   : > { %v1026_v21 = vmin.f32 %v966_v19, 0.0  ;;  %vm1018_vm6 = vcmp.gt.f32.partialorder %v966_v19, 0.0 }
 0x295   : > { %v1033_v24 = vmul.f32 1.442695, %v1025_v58 }
 0x296   : > { %v1035_v59 = vmul.f32 1.442695, %v1026_v21 }
 0x297   : > { %2635 = vpow2.f32 %v1033_v24 }
 0x298   : > { %v945_v23 = vpop.f32.mrf.mxu0  ;;  %2637 = vpow2.f32 %v1035_v59  ;;  %v1236_v59 = vld [vmem:[%s3097_s4 + $0xd8] sm:$0xff] }
 0x299   : > { %v946_v26 = vadd.f32 %v945_v23, %v3197_v16  ;;  %v968_v27 = vpop.f32.mrf.mxu1 }
 0x29a   : > { %v969_v28 = vadd.f32 %v968_v27, %v3197_v16  ;;  %v1235_v27 = vld [vmem:[%s3097_s4 + $0xd0] sm:$0xff] }
 0x29b   : > { %v1029_v29 = vmin.f32 %v946_v26, 0.0  ;;  %vm1021_vm3 = vcmp.gt.f32.partialorder %v946_v26, 0.0 }
 0x29c   : > { %v1030_v30 = vmin.f32 %v969_v28, 0.0  ;;  %vm1022_vm4 = vcmp.gt.f32.partialorder %v969_v28, 0.0 }
 0x29d   : > { %v1041_v15 = vmul.f32 1.442695, %v1029_v29  ;;  %v2636_v10 = vpop.eup %2635  ;;  %v1231_v29 = vld [vmem:[%s3097_s4 + $0x50] sm:$0xff] }
 0x29e   : > { %v1043_v32 = vmul.f32 1.442695, %v1030_v30  ;;  %v2638_v2 = vpop.eup %2637  ;;  %v2336_v5 = vadd.f32 -1.0, %v2636_v10  ;;  %v1232_v30 = vld [vmem:[%s3097_s4 + $0x58] sm:$0xff] }
 0x29f   : > { %2639 = vpow2.f32 %v1041_v15  ;;  %v2337_v37 = vadd.f32 -1.0, %v2638_v2 }
 0x2a0   : > { %2641 = vpow2.f32 %v1043_v32  ;;  %v1057_v41 = vsel %vm1017_vm5, %v943_v55, %v2336_v5 }
 0x2a1   : > { %v1058_v42 = vsel %vm1018_vm6, %v966_v19, %v2337_v37 }
 0x2a5   : > { %v2640_v33 = vpop.eup %2639 }
 0x2a6   : > { %v2642_v34 = vpop.eup %2641  ;;  %v2340_v35 = vadd.f32 -1.0, %v2640_v33 }
 0x2a7   : > { %v2341_v43 = vadd.f32 -1.0, %v2642_v34 }
 0x2a8   : > { %v1061_v38 = vsel %vm1021_vm3, %v946_v26, %v2340_v35 }
 0x2a9   : > { %v988_v20 = vpop.f32.mrf.mxu2  ;;  %1079 = vmatpush.msrb.mxu0 %v1061_v38  ;;  %v1062_v25 = vsel %vm1022_vm4, %v969_v28, %v2341_v43  ;;  %v3449_v28 = vld [vmem:[%s3749_s1 + $0x8] sm:$0xff] }
 0x2aa   : > { %v989_v11 = vadd.f32 %v988_v20, %v3199_v17  ;;  %v1011_v39 = vpop.f32.mrf.mxu3  ;;  %1102 = vmatpush.msrb.mxu1 %v1062_v25 }
 0x2ab   : > { %v1012_v40 = vadd.f32 %v1011_v39, %v3199_v17  ;;  %1080 = vmatpush.msrb.mxu0 %v1057_v41 }
 0x2ac   : > { %1103 = vmatpush.msrb.mxu1 %v1058_v42  ;;  %2344 = vmatmul.msk.f32.vlgmr.msrb.gmra.mxu0 %vm282_vm0, %v3215_v60  ;;  %v1027_v48 = vmin.f32 %v989_v11, 0.0  ;;  %vm1019_vm9 = vcmp.gt.f32.partialorder %v989_v11, 0.0 }
 0x2ad   : > { %2346 = vmatmul.msk.f32.vlgmr.msrb.gmra.mxu1 %vm282_vm0, %v3215_v60  ;;  %1251 = vmatpush.msra.mxu0 %v1233_v54  ;;  %v1028_v0 = vmin.f32 %v1012_v40, 0.0  ;;  %vm1020_vm10 = vcmp.gt.f32.partialorder %v1012_v40, 0.0 }
 0x2ae   : > { %1274 = vmatpush.msra.mxu1 %v1234_v45  ;;  %v1037_v53 = vmul.f32 1.442695, %v1027_v48 }
 0x2af   : > { %1252 = vmatpush.msra.mxu0 %v1229_v46  ;;  %v1039_v47 = vmul.f32 1.442695, %v1028_v0 }
 0x2b0   : > { %1275 = vmatpush.msra.mxu1 %v1230_v50  ;;  %2643 = vpow2.f32 %v1037_v53 }
 0x2b1   : > { %v991_v51 = vpop.f32.mrf.mxu2  ;;  %2645 = vpow2.f32 %v1039_v47 }
 0x2b2   : > { %v992_v56 = vadd.f32 %v991_v51, %v3197_v16  ;;  %v1014_v57 = vpop.f32.mrf.mxu3 }
 0x2b3   : > { %v1015_v61 = vadd.f32 %v1014_v57, %v3197_v16 }
 0x2b4   : > { %v1031_v49 = vmin.f32 %v992_v56, 0.0  ;;  %2345 = vmatmul.msk.f32.gmra.mxu0 %vm282_vm0, %v3226_v7  ;;  %vm1023_vm7 = vcmp.gt.f32.partialorder %v992_v56, 0.0 }
 0x2b5   : > { %v1032_v62 = vmin.f32 %v1015_v61, 0.0  ;;  %2347 = vmatmul.msk.f32.gmra.mxu1 %vm282_vm0, %v3226_v7  ;;  %vm1024_vm8 = vcmp.gt.f32.partialorder %v1015_v61, 0.0 }
 0x2b6   : > { %v1045_v63 = vmul.f32 1.442695, %v1031_v49  ;;  %v2644_v3 = vpop.eup %2643 }
 0x2b7   : > { %v1047_v1 = vmul.f32 1.442695, %v1032_v62  ;;  %v2646_v4 = vpop.eup %2645  ;;  %v2338_v19 = vadd.f32 -1.0, %v2644_v3 }
 0x2b8   : > { %2647 = vpow2.f32 %v1045_v63  ;;  %v2339_v21 = vadd.f32 -1.0, %v2646_v4 }
 0x2b9   : > { %2649 = vpow2.f32 %v1047_v1  ;;  %v1059_v24 = vsel %vm1019_vm9, %v989_v11, %v2338_v19 }
 0x2ba   : > { %v1060_v26 = vsel %vm1020_vm10, %v1012_v40, %v2339_v21 }
 0x2bc   : > { %2360 = vmatmul.msk.f32.vlgmr.msra.gmra.mxu0 %vm282_vm0, %v3118_v9 }
 0x2bd   : > { %2362 = vmatmul.msk.f32.vlgmr.msra.gmra.mxu1 %vm282_vm0, %v3436_v8 }
 0x2be   : > { %v2648_v6 = vpop.eup %2647 }
 0x2bf   : > { %v2650_v55 = vpop.eup %2649  ;;  %v2342_v18 = vadd.f32 -1.0, %v2648_v6 }
 0x2c0   : > { %v2343_v58 = vadd.f32 -1.0, %v2650_v55 }
 0x2c1   : > { %v1063_v23 = vsel %vm1023_vm7, %v992_v56, %v2342_v18 }
 0x2c2   : > { %1125 = vmatpush.msrb.mxu2 %v1063_v23  ;;  %v1064_v9 = vsel %vm1024_vm8, %v1015_v61, %v2343_v58 }
 0x2c3   : > { %1148 = vmatpush.msrb.mxu3 %v1064_v9 }
 0x2c4   : > { %1126 = vmatpush.msrb.mxu2 %v1059_v24  ;;  %2361 = vmatmul.msk.f32.gmra.mxu0 %vm282_vm0, %v3449_v28 }
 0x2c5   : > { %1149 = vmatpush.msrb.mxu3 %v1060_v26  ;;  %2348 = vmatmul.msk.f32.vlgmr.msrb.gmra.mxu2 %vm282_vm0, %v3215_v60 }
 0x2c6   : > { %2350 = vmatmul.msk.f32.vlgmr.msrb.gmra.mxu3 %vm282_vm0, %v3215_v60  ;;  %2363 = vmatmul.msk.f32.gmra.mxu1 %vm282_vm0, %v3449_v28 }
 0x2c7   : > { %1297 = vmatpush.msra.mxu2 %v1235_v27  ;;  %1320 = vmatpush.msra.mxu3 %v1236_v59 }
 0x2c9   : > { %1298 = vmatpush.msra.mxu2 %v1231_v29  ;;  %1321 = vmatpush.msra.mxu3 %v1232_v30 }
 0x2cd   : > { %2349 = vmatmul.msk.f32.gmra.mxu2 %vm282_vm0, %v3226_v7 }
 0x2ce   : > { %2351 = vmatmul.msk.f32.gmra.mxu3 %vm282_vm0, %v3226_v7 }
 0x2d5   : > { %2364 = vmatmul.msk.f32.vlgmr.msra.gmra.mxu2 %vm282_vm0, %v3436_v8 }
 0x2d6   : > { %2366 = vmatmul.msk.f32.vlgmr.msra.gmra.mxu3 %vm282_vm0, %v3436_v8 }
 0x2dd   : > { %2365 = vmatmul.msk.f32.gmra.mxu2 %vm282_vm0, %v3449_v28 }
 0x2de   : > { %2367 = vmatmul.msk.f32.gmra.mxu3 %vm282_vm0, %v3449_v28 }
 0x329   : > { %v1082_v60 = vpop.f32.mrf.mxu0 }
 0x32a   : > { %v1083_v15 = vadd.f32 %v1082_v60, %v3270_v36  ;;  %v1105_v32 = vpop.f32.mrf.mxu1 }
 0x32b   : > { %v1106_v10 = vadd.f32 %v1105_v32, %v3270_v36 }
 0x32c   : > { %v1165_v2 = vmin.f32 %v1083_v15, 0.0  ;;  %vm1157_vm11 = vcmp.gt.f32.partialorder %v1083_v15, 0.0 }
 0x32d   : > { %v1166_v7 = vmin.f32 %v1106_v10, 0.0  ;;  %vm1158_vm12 = vcmp.gt.f32.partialorder %v1106_v10, 0.0 }
 0x32e   : > { %v1173_v33 = vmul.f32 1.442695, %v1165_v2 }
 0x32f   : > { %v1175_v34 = vmul.f32 1.442695, %v1166_v7 }
 0x330   : > { %2651 = vpow2.f32 %v1173_v33 }
 0x331   : > { %2653 = vpow2.f32 %v1175_v34  ;;  %v1085_v35 = vpop.f32.mrf.mxu0 }
 0x332   : > { %v1086_v5 = vadd.f32 %v1085_v35, %v3289_v52  ;;  %v1108_v43 = vpop.f32.mrf.mxu1 }
 0x333   : > { %v1109_v37 = vadd.f32 %v1108_v43, %v3289_v52 }
 0x334   : > { %v1169_v20 = vmin.f32 %v1086_v5, 0.0  ;;  %vm1161_vm13 = vcmp.gt.f32.partialorder %v1086_v5, 0.0 }
 0x335   : > { %v1170_v38 = vmin.f32 %v1109_v37, 0.0  ;;  %vm1162_vm14 = vcmp.gt.f32.partialorder %v1109_v37, 0.0 }
 0x336   : > { %v2652_v11 = vpop.eup %2651  ;;  %v1181_v39 = vmul.f32 1.442695, %v1169_v20 }
 0x337   : > { %v2654_v25 = vpop.eup %2653  ;;  %v2352_v40 = vadd.f32 -1.0, %v2652_v11  ;;  %v1183_v41 = vmul.f32 1.442695, %v1170_v38 }
 0x338   : > { %v2353_v54 = vadd.f32 -1.0, %v2654_v25  ;;  %2655 = vpow2.f32 %v1181_v39 }
 0x339   : > { %v1197_v42 = vsel %vm1157_vm11, %v1083_v15, %v2352_v40  ;;  %2657 = vpow2.f32 %v1183_v41  ;;  %v1254_v45 = vpop.f32.mrf.mxu0 }
 0x33a   : > { %v1205_v46 = vmul.f32 %v1197_v42, %v3309_v22  ;;  %v1198_v48 = vsel %vm1158_vm12, %v1106_v10, %v2353_v54  ;;  %v1277_v50 = vpop.f32.mrf.mxu1  ;;  %v3476_v51 = vadd.f32 %v1254_v45, %v3155_v14 }
 0x33b   : > { %v1206_v0 = vmul.f32 %v1198_v48, %v3309_v22  ;;  %v3480_v56 = vadd.f32 %v1277_v50, %v3155_v14 }
 0x33c   : > { %v1213_v53 = vadd.f32 %v1205_v46, %v3320_v31  ;;  %v1337_v62 = vmin.f32 %v3476_v51, 0.0  ;;  %vm1329_vm2 = vcmp.gt.f32.partialorder %v3476_v51, 0.0 }
 0x33d   : > { %v1214_v57 = vadd.f32 %v1206_v0, %v3320_v31  ;;  %v1338_v1 = vmin.f32 %v3480_v56, 0.0  ;;  %vm1330_vm3 = vcmp.gt.f32.partialorder %v3480_v56, 0.0 }
 0x33e   : > { %v2656_v47 = vpop.eup %2655  ;;  %1221 = vst [vmem:[%s3327_s24 + $0x20] sm:$0xff] %v1213_v53  ;;  %v1345_v19 = vmul.f32 1.442695, %v1337_v62 }
 0x33f   : > { %v2658_v61 = vpop.eup %2657  ;;  %1222 = vst [vmem:[%s3327_s24 + $0x28] sm:$0xff] %v1214_v57  ;;  %v2356_v49 = vadd.f32 -1.0, %v2656_v47  ;;  %v1347_v9 = vmul.f32 1.442695, %v1338_v1 }
 0x340   : > { %v2357_v63 = vadd.f32 -1.0, %v2658_v61  ;;  %2659 = vpow2.f32 %v1345_v19 }
 0x341   : > { %v1201_v3 = vsel %vm1161_vm13, %v1086_v5, %v2356_v49  ;;  %v1257_v55 = vpop.f32.mrf.mxu0  ;;  %2661 = vpow2.f32 %v1347_v9 }
 0x342   : > { %v1209_v4 = vmul.f32 %v1201_v3, %v3332_v44  ;;  %v1202_v6 = vsel %vm1162_vm14, %v1109_v37, %v2357_v63  ;;  %v1258_v58 = vadd.f32 %v1257_v55, %v3153_v13  ;;  %v3503_v63 = vld [vmem:[#allocation5] sm:$0xff] }
 0x343   : > { %v1210_v18 = vmul.f32 %v1202_v6, %v3332_v44  ;;  %v1280_v21 = vpop.f32.mrf.mxu1 }
 0x344   : > { %v1217_v23 = vadd.f32 %v1209_v4, %v3370_v12  ;;  %v1281_v24 = vadd.f32 %v1280_v21, %v3153_v13  ;;  %v1341_v27 = vmin.f32 %v1258_v58, 0.0  ;;  %vm1333_vm15 = vcmp.gt.f32.partialorder %v1258_v58, 0.0 }
 0x345   : > { %v1218_v26 = vadd.f32 %v1210_v18, %v3370_v12 }
 0x346   : > { %1225 = vst [vmem:[%s3327_s24 + $0xa0] sm:$0xff] %v1217_v23  ;;  %v1342_v59 = vmin.f32 %v1281_v24, 0.0  ;;  %v1353_v29 = vmul.f32 1.442695, %v1341_v27  ;;  %v2660_v34 = vpop.eup %2659  ;;  %vm1334_vm1 = vcmp.gt.f32.partialorder %v1281_v24, 0.0 }
 0x347   : > { %1226 = vst [vmem:[%s3327_s24 + $0xa8] sm:$0xff] %v1218_v26  ;;  %v2662_v5 = vpop.eup %2661  ;;  %v2368_v25 = vadd.f32 -1.0, %v2660_v34 }
 0x348   : > { %v1128_v30 = vpop.f32.mrf.mxu2  ;;  %v1355_v60 = vmul.f32 1.442695, %v1342_v59  ;;  %2663 = vpow2.f32 %v1353_v29  ;;  %v2369_v54 = vadd.f32 -1.0, %v2662_v5  ;;  %v3517_v59 = vld [vmem:[#allocation5 + $0x8] sm:$0xff] }
 0x349   : > { %v1129_v15 = vadd.f32 %v1128_v30, %v3270_v36  ;;  %v1151_v32 = vpop.f32.mrf.mxu3  ;;  %v1369_v53 = vsel %vm1329_vm2, %v3476_v51, %v2368_v25 }
 0x34a   : > { %v1152_v10 = vadd.f32 %v1151_v32, %v3270_v36  ;;  %2665 = vpow2.f32 %v1355_v60  ;;  %v1370_v49 = vsel %vm1330_vm3, %v3480_v56, %v2369_v54 }
 0x34b   : > { %v1167_v2 = vmin.f32 %v1129_v15, 0.0  ;;  %vm1159_vm4 = vcmp.gt.f32.partialorder %v1129_v15, 0.0 }
 0x34c   : > { %v1168_v7 = vmin.f32 %v1152_v10, 0.0  ;;  %vm1160_vm5 = vcmp.gt.f32.partialorder %v1152_v10, 0.0 }
 0x34d   : > { %v1177_v33 = vmul.f32 1.442695, %v1167_v2 }
 0x34e   : > { %v1179_v35 = vmul.f32 1.442695, %v1168_v7  ;;  %v2664_v43 = vpop.eup %2663 }
 0x34f   : > { %2667 = vpow2.f32 %v1177_v33  ;;  %v2372_v38 = vadd.f32 -1.0, %v2664_v43 }
 0x350   : > { %2669 = vpow2.f32 %v1179_v35  ;;  %v1131_v37 = vpop.f32.mrf.mxu2  ;;  %v2666_v20 = vpop.eup %2665 }
 0x351   : > { %v1132_v11 = vadd.f32 %v1131_v37, %v3289_v52  ;;  %v1154_v39 = vpop.f32.mrf.mxu3  ;;  %v2373_v40 = vadd.f32 -1.0, %v2666_v20  ;;  %v1373_v45 = vsel %vm1333_vm15, %v1258_v58, %v2372_v38 }
 0x352   : > { %v1155_v41 = vadd.f32 %v1154_v39, %v3289_v52  ;;  %1391 = vmatpush.msrb.mxu0 %v1373_v45 }
 0x353   : > { %v1171_v42 = vmin.f32 %v1132_v11, 0.0  ;;  %v1374_v48 = vsel %vm1334_vm1, %v1281_v24, %v2373_v40  ;;  %vm1163_vm6 = vcmp.gt.f32.partialorder %v1132_v11, 0.0 }
 0x354   : > { %v1172_v46 = vmin.f32 %v1155_v41, 0.0  ;;  %1414 = vmatpush.msrb.mxu1 %v1374_v48  ;;  %1392 = vmatpush.msrb.mxu0 %v1369_v53  ;;  %vm1164_vm7 = vcmp.gt.f32.partialorder %v1155_v41, 0.0 }
 0x355   : > { %v2668_v50 = vpop.eup %2667  ;;  %v1185_v0 = vmul.f32 1.442695, %v1171_v42  ;;  %2376 = vmatmul.msk.f32.vlgmr.msrb.gmra.mxu0 %vm282_vm0, %v3503_v63 }
 0x356   : > { %v2670_v57 = vpop.eup %2669  ;;  %v2354_v47 = vadd.f32 -1.0, %v2668_v50  ;;  %v1187_v61 = vmul.f32 1.442695, %v1172_v46  ;;  %1415 = vmatpush.msrb.mxu1 %v1370_v49 }
 0x357   : > { %v2355_v62 = vadd.f32 -1.0, %v2670_v57  ;;  %2671 = vpow2.f32 %v1185_v0  ;;  %2378 = vmatmul.msk.f32.vlgmr.msrb.gmra.mxu1 %vm282_vm0, %v3503_v63 }
 0x358   : > { %v1199_v1 = vsel %vm1159_vm4, %v1129_v15, %v2354_v47  ;;  %2673 = vpow2.f32 %v1187_v61  ;;  %v1300_v51 = vpop.f32.mrf.mxu2 }
 0x359   : > { %v1207_v56 = vmul.f32 %v1199_v1, %v3309_v22  ;;  %v1200_v3 = vsel %vm1160_vm5, %v1152_v10, %v2355_v62  ;;  %v1301_v4 = vadd.f32 %v1300_v51, %v3155_v14  ;;  %v1323_v6 = vpop.f32.mrf.mxu3 }
 0x35a   : > { %v1208_v55 = vmul.f32 %v1200_v3, %v3309_v22  ;;  %v1324_v18 = vadd.f32 %v1323_v6, %v3155_v14 }
 0x35b   : > { %v1215_v19 = vadd.f32 %v1207_v56, %v3320_v31  ;;  %v1339_v23 = vmin.f32 %v1301_v4, 0.0  ;;  %vm1331_vm10 = vcmp.gt.f32.partialorder %v1301_v4, 0.0 }
 0x35c   : > { %v1216_v58 = vadd.f32 %v1208_v55, %v3320_v31  ;;  %v1340_v26 = vmin.f32 %v1324_v18, 0.0  ;;  %vm1332_vm11 = vcmp.gt.f32.partialorder %v1324_v18, 0.0 }
 0x35d   : > { %v2672_v21 = vpop.eup %2671  ;;  %1223 = vst [vmem:[%s3327_s24 + $0x30] sm:$0xff] %v1215_v19  ;;  %2377 = vmatmul.msk.f32.gmra.mxu0 %vm282_vm0, %v3517_v59  ;;  %v1349_v32 = vmul.f32 1.442695, %v1339_v23 }
 0x35e   : > { %v2674_v9 = vpop.eup %2673  ;;  %1224 = vst [vmem:[%s3327_s24 + $0x38] sm:$0xff] %v1216_v58  ;;  %v2358_v24 = vadd.f32 -1.0, %v2672_v21  ;;  %v1351_v33 = vmul.f32 1.442695, %v1340_v26 }
 0x35f   : > { %v2359_v27 = vadd.f32 -1.0, %v2674_v9  ;;  %2379 = vmatmul.msk.f32.gmra.mxu1 %vm282_vm0, %v3517_v59  ;;  %2675 = vpow2.f32 %v1349_v32 }
 0x360   : > { %v1203_v29 = vsel %vm1163_vm6, %v1132_v11, %v2358_v24  ;;  %v1303_v30 = vpop.f32.mrf.mxu2  ;;  %2677 = vpow2.f32 %v1351_v33  ;;  %v3545_v33 = vld [vmem:[#allocation5 + $0x10] sm:$0xff] }
 0x361   : > { %v1211_v60 = vmul.f32 %v1203_v29, %v3332_v44  ;;  %v1204_v15 = vsel %vm1164_vm7, %v1155_v41, %v2359_v27  ;;  %v1304_v10 = vadd.f32 %v1303_v30, %v3153_v13  ;;  %v1326_v2 = vpop.f32.mrf.mxu3 }
 0x362   : > { %v1212_v7 = vmul.f32 %v1204_v15, %v3332_v44  ;;  %v1327_v34 = vadd.f32 %v1326_v2, %v3153_v13 }
 0x363   : > { %v1219_v35 = vadd.f32 %v1211_v60, %v3370_v12  ;;  %v1343_v5 = vmin.f32 %v1304_v10, 0.0  ;;  %vm1335_vm8 = vcmp.gt.f32.partialorder %v1304_v10, 0.0 }
 0x364   : > { %v1220_v43 = vadd.f32 %v1212_v7, %v3370_v12  ;;  %v1344_v37 = vmin.f32 %v1327_v34, 0.0  ;;  %vm1336_vm9 = vcmp.gt.f32.partialorder %v1327_v34, 0.0  ;;  %v1686_v7 = vld [vmem:[%s3097_s4 + $0xe8] sm:$0xff] }
 0x365   : > { %1227 = vst [vmem:[%s3327_s24 + $0xb0] sm:$0xff] %v1219_v35  ;;  %v1357_v20 = vmul.f32 1.442695, %v1343_v5  ;;  %v2676_v11 = vpop.eup %2675  ;;  %v1682_v35 = vld [vmem:[%s3097_s4 + $0x68] sm:$0xff] }
 0x366   : > { %1228 = vst [vmem:[%s3327_s24 + $0xb8] sm:$0xff] %v1220_v43  ;;  %v1359_v38 = vmul.f32 1.442695, %v1344_v37  ;;  %v2678_v39 = vpop.eup %2677  ;;  %v2370_v54 = vadd.f32 -1.0, %v2676_v11 }
 0x367   : > { %2679 = vpow2.f32 %v1357_v20  ;;  %v2371_v45 = vadd.f32 -1.0, %v2678_v39  ;;  %v3554_v20 = vld [vmem:[#allocation5 + $0x18] sm:$0xff] }
 0x368   : > { %2681 = vpow2.f32 %v1359_v38  ;;  %v1371_v50 = vsel %vm1331_vm10, %v1301_v4, %v2370_v54 }
 0x369   : > { %v1372_v0 = vsel %vm1332_vm11, %v1324_v18, %v2371_v45 }
 0x36d   : > { %v2680_v25 = vpop.eup %2679 }
 0x36e   : > { %v2682_v40 = vpop.eup %2681  ;;  %v2374_v41 = vadd.f32 -1.0, %v2680_v25 }
 0x36f   : > { %v2375_v42 = vadd.f32 -1.0, %v2682_v40 }
 0x370   : > { %v1375_v46 = vsel %vm1335_vm8, %v1304_v10, %v2374_v41  ;;  %v1685_v10 = vld [vmem:[%s3097_s4 + $0xe0] sm:$0xff] }
 0x371   : > { %1437 = vmatpush.msrb.mxu2 %v1375_v46  ;;  %v1376_v48 = vsel %vm1336_vm9, %v1327_v34, %v2375_v42  ;;  %v1681_v34 = vld [vmem:[%s3097_s4 + $0x60] sm:$0xff] }
 0x372   : > { %1460 = vmatpush.msrb.mxu3 %v1376_v48 }
 0x373   : > { %1438 = vmatpush.msrb.mxu2 %v1371_v50 }
 0x374   : > { %1461 = vmatpush.msrb.mxu3 %v1372_v0  ;;  %2380 = vmatmul.msk.f32.vlgmr.msrb.gmra.mxu2 %vm282_vm0, %v3503_v63 }
 0x375   : > { %2382 = vmatmul.msk.f32.vlgmr.msrb.gmra.mxu3 %vm282_vm0, %v3503_v63 }
 0x37c   : > { %2381 = vmatmul.msk.f32.gmra.mxu2 %vm282_vm0, %v3517_v59 }
 0x37d   : > { %2383 = vmatmul.msk.f32.gmra.mxu3 %vm282_vm0, %v3517_v59 }
 0x3d2   : > { %v1394_v53 = vpop.f32.mrf.mxu0 }
 0x3d3   : > { %v1395_v57 = vadd.f32 %v1394_v53, %v3199_v17 }
 0x3d4   : > { %v1417_v47 = vpop.f32.mrf.mxu1 }
 0x3d5   : > { %v1418_v61 = vadd.f32 %v1417_v47, %v3199_v17  ;;  %v1477_v49 = vmin.f32 %v1395_v57, 0.0  ;;  %vm1469_vm14 = vcmp.gt.f32.partialorder %v1395_v57, 0.0 }
 0x3d7   : > { %v1478_v62 = vmin.f32 %v1418_v61, 0.0  ;;  %v1485_v51 = vmul.f32 1.442695, %v1477_v49  ;;  %vm1470_vm15 = vcmp.gt.f32.partialorder %v1418_v61, 0.0 }
 0x3d9   : > { %v1487_v4 = vmul.f32 1.442695, %v1478_v62  ;;  %2683 = vpow2.f32 %v1485_v51 }
 0x3da   : > { %v1397_v1 = vpop.f32.mrf.mxu0 }
 0x3db   : > { %v1398_v56 = vadd.f32 %v1397_v1, %v3197_v16  ;;  %2685 = vpow2.f32 %v1487_v4 }
 0x3dc   : > { %v1420_v3 = vpop.f32.mrf.mxu1 }
 0x3dd   : > { %v1421_v6 = vadd.f32 %v1420_v3, %v3197_v16  ;;  %v1481_v55 = vmin.f32 %v1398_v56, 0.0  ;;  %vm1473_vm12 = vcmp.gt.f32.partialorder %v1398_v56, 0.0 }
 0x3df   : > { %v1482_v18 = vmin.f32 %v1421_v6, 0.0  ;;  %v1493_v19 = vmul.f32 1.442695, %v1481_v55  ;;  %v2684_v21 = vpop.eup %2683  ;;  %vm1474_vm13 = vcmp.gt.f32.partialorder %v1421_v6, 0.0 }
 0x3e0   : > { %v2384_v27 = vadd.f32 -1.0, %v2684_v21 }
 0x3e1   : > { %v1495_v58 = vmul.f32 1.442695, %v1482_v18  ;;  %2687 = vpow2.f32 %v1493_v19  ;;  %v2686_v23 = vpop.eup %2685  ;;  %v1688_v18 = vld [vmem:[%s3097_s4 + $0xf8] sm:$0xff]  ;;  %v1683_v19 = vld [vmem:[%s3097_s4 + $0x70] sm:$0xff] }
 0x3e2   : > { %v2385_v30 = vadd.f32 -1.0, %v2686_v23  ;;  %v1509_v32 = vsel %vm1469_vm14, %v1395_v57, %v2384_v27 }
 0x3e3   : > { %2689 = vpow2.f32 %v1495_v58  ;;  %v1684_v58 = vld [vmem:[%s3097_s4 + $0x78] sm:$0xff] }
 0x3e4   : > { %v1510_v2 = vsel %vm1470_vm15, %v1418_v61, %v2385_v30 }
 0x3e7   : > { %v2688_v9 = vpop.eup %2687 }
 0x3e8   : > { %v2388_v26 = vadd.f32 -1.0, %v2688_v9 }
 0x3e9   : > { %v2690_v24 = vpop.eup %2689 }
 0x3ea   : > { %v2389_v29 = vadd.f32 -1.0, %v2690_v24  ;;  %v1513_v60 = vsel %vm1473_vm12, %v1398_v56, %v2388_v26 }
 0x3eb   : > { %1531 = vmatpush.msra.mxu0 %v1513_v60 }
 0x3ec   : > { %v1514_v15 = vsel %vm1474_vm13, %v1421_v6, %v2389_v29  ;;  %v1687_v6 = vld [vmem:[%s3097_s4 + $0xf0] sm:$0xff]  ;;  %s2148_s4 = sshll.u32 %s3327_s24, 4  ;;  %s2149_s4 = int_to_ptr.vmem [resolvable:$true] %s2148_s4 }
 0x3ed   : > { %1554 = vmatpush.msra.mxu1 %v1514_v15  ;;  %1532 = vmatpush.msra.mxu0 %v1509_v32 }
 0x3ee   : > { %2392 = vmatmul.msk.f32.vlgmr.msra.gmra.mxu0 %vm282_vm0, %v3545_v33 }
 0x3ef   : > { %1555 = vmatpush.msra.mxu1 %v1510_v2  ;;  %1703 = vmatpush.msrb.mxu0 %v1685_v10 }
 0x3f0   : > { %2394 = vmatmul.msk.f32.vlgmr.msra.gmra.mxu1 %vm282_vm0, %v3545_v33 }
 0x3f1   : > { %1726 = vmatpush.msrb.mxu1 %v1686_v7  ;;  %1704 = vmatpush.msrb.mxu0 %v1681_v34 }
 0x3f3   : > { %1727 = vmatpush.msrb.mxu1 %v1682_v35 }
 0x3f6   : > { %2393 = vmatmul.msk.f32.gmra.mxu0 %vm282_vm0, %v3554_v20 }
 0x3f7   : > { %v1440_v5 = vpop.f32.mrf.mxu2 }
 0x3f8   : > { %v1441_v43 = vadd.f32 %v1440_v5, %v3199_v17  ;;  %v1463_v37 = vpop.f32.mrf.mxu3  ;;  %2395 = vmatmul.msk.f32.gmra.mxu1 %vm282_vm0, %v3554_v20 }
 0x3f9   : > { %v1464_v38 = vadd.f32 %v1463_v37, %v3199_v17 }
 0x3fa   : > { %v1479_v11 = vmin.f32 %v1441_v43, 0.0  ;;  %vm1471_vm3 = vcmp.gt.f32.partialorder %v1441_v43, 0.0 }
 0x3fb   : > { %v1480_v39 = vmin.f32 %v1464_v38, 0.0  ;;  %vm1472_vm4 = vcmp.gt.f32.partialorder %v1464_v38, 0.0 }
 0x3fc   : > { %v1489_v40 = vmul.f32 1.442695, %v1479_v11 }
 0x3fd   : > { %v1491_v42 = vmul.f32 1.442695, %v1480_v39 }
 0x3fe   : > { %2408 = vmatmul.msk.f32.vlgmr.msrb.gmra.mxu0 %vm282_vm0, %v3436_v8  ;;  %2691 = vpow2.f32 %v1489_v40 }
 0x3ff   : > { %v1443_v25 = vpop.f32.mrf.mxu2  ;;  %2693 = vpow2.f32 %v1491_v42 }
 0x400   : > { %v1444_v41 = vadd.f32 %v1443_v25, %v3197_v16  ;;  %v1466_v54 = vpop.f32.mrf.mxu3  ;;  %2410 = vmatmul.msk.f32.vlgmr.msrb.gmra.mxu1 %vm282_vm0, %v3436_v8 }
 0x401   : > { %v1467_v45 = vadd.f32 %v1466_v54, %v3197_v16 }
 0x402   : > { %v1483_v46 = vmin.f32 %v1444_v41, 0.0  ;;  %vm1475_vm1 = vcmp.gt.f32.partialorder %v1444_v41, 0.0 }
 0x403   : > { %v1484_v48 = vmin.f32 %v1467_v45, 0.0  ;;  %vm1476_vm2 = vcmp.gt.f32.partialorder %v1467_v45, 0.0 }
 0x404   : > { %v1497_v50 = vmul.f32 1.442695, %v1483_v46  ;;  %v2692_v53 = vpop.eup %2691 }
 0x405   : > { %v1499_v0 = vmul.f32 1.442695, %v1484_v48  ;;  %v2694_v57 = vpop.eup %2693  ;;  %v2386_v62 = vadd.f32 -1.0, %v2692_v53 }
 0x406   : > { %2695 = vpow2.f32 %v1497_v50  ;;  %2409 = vmatmul.msk.f32.gmra.mxu0 %vm282_vm0, %v3449_v28  ;;  %v2387_v51 = vadd.f32 -1.0, %v2694_v57 }
 0x407   : > { %2697 = vpow2.f32 %v1499_v0  ;;  %v1511_v4 = vsel %vm1471_vm3, %v1441_v43, %v2386_v62 }
 0x408   : > { %2411 = vmatmul.msk.f32.gmra.mxu1 %vm282_vm0, %v3449_v28  ;;  %v1512_v55 = vsel %vm1472_vm4, %v1464_v38, %v2387_v51 }
 0x40c   : > { %v2696_v47 = vpop.eup %2695 }
 0x40d   : > { %v2698_v61 = vpop.eup %2697  ;;  %v2390_v49 = vadd.f32 -1.0, %v2696_v47 }
 0x40e   : > { %v2391_v1 = vadd.f32 -1.0, %v2698_v61 }
 0x40f   : > { %v1515_v56 = vsel %vm1475_vm1, %v1444_v41, %v2390_v49 }
 0x410   : > { %1577 = vmatpush.msra.mxu2 %v1515_v56  ;;  %v1516_v3 = vsel %vm1476_vm2, %v1467_v45, %v2391_v1 }
 0x411   : > { %1600 = vmatpush.msra.mxu3 %v1516_v3 }
 0x412   : > { %1578 = vmatpush.msra.mxu2 %v1511_v4 }
 0x413   : > { %1601 = vmatpush.msra.mxu3 %v1512_v55  ;;  %2396 = vmatmul.msk.f32.vlgmr.msra.gmra.mxu2 %vm282_vm0, %v3545_v33 }
 0x414   : > { %2398 = vmatmul.msk.f32.vlgmr.msra.gmra.mxu3 %vm282_vm0, %v3545_v33  ;;  %1749 = vmatpush.msrb.mxu2 %v1687_v6 }
 0x415   : > { %1772 = vmatpush.msrb.mxu3 %v1688_v18 }
 0x416   : > { %1750 = vmatpush.msrb.mxu2 %v1683_v19 }
 0x417   : > { %1773 = vmatpush.msrb.mxu3 %v1684_v58 }
 0x41b   : > { %2397 = vmatmul.msk.f32.gmra.mxu2 %vm282_vm0, %v3554_v20 }
 0x41c   : > { %2399 = vmatmul.msk.f32.gmra.mxu3 %vm282_vm0, %v3554_v20 }
 0x423   : > { %2412 = vmatmul.msk.f32.vlgmr.msrb.gmra.mxu2 %vm282_vm0, %v3436_v8 }
 0x424   : > { %2414 = vmatmul.msk.f32.vlgmr.msrb.gmra.mxu3 %vm282_vm0, %v3436_v8 }
 0x42b   : > { %2413 = vmatmul.msk.f32.gmra.mxu2 %vm282_vm0, %v3449_v28 }
 0x42c   : > { %2415 = vmatmul.msk.f32.gmra.mxu3 %vm282_vm0, %v3449_v28 }
 0x46b   : > { %v1534_v21 = vpop.f32.mrf.mxu0 }
 0x46c   : > { %v1535_v23 = vadd.f32 %v1534_v21, %v3270_v36 }
 0x46d   : > { %v1557_v9 = vpop.f32.mrf.mxu1 }
 0x46e   : > { %v1558_v24 = vadd.f32 %v1557_v9, %v3270_v36  ;;  %v1617_v26 = vmin.f32 %v1535_v23, 0.0  ;;  %vm1609_vm5 = vcmp.gt.f32.partialorder %v1535_v23, 0.0 }
 0x470   : > { %v1618_v27 = vmin.f32 %v1558_v24, 0.0  ;;  %v1625_v29 = vmul.f32 1.442695, %v1617_v26  ;;  %vm1610_vm6 = vcmp.gt.f32.partialorder %v1558_v24, 0.0 }
 0x472   : > { %v1627_v30 = vmul.f32 1.442695, %v1618_v27  ;;  %2699 = vpow2.f32 %v1625_v29 }
 0x473   : > { %v1537_v60 = vpop.f32.mrf.mxu0 }
 0x474   : > { %2701 = vpow2.f32 %v1627_v30  ;;  %v1538_v8 = vadd.f32 %v1537_v60, %v3289_v52 }
 0x475   : > { %v1560_v15 = vpop.f32.mrf.mxu1 }
 0x476   : > { %v1561_v32 = vadd.f32 %v1560_v15, %v3289_v52  ;;  %v1621_v10 = vmin.f32 %v1538_v8, 0.0  ;;  %vm1613_vm7 = vcmp.gt.f32.partialorder %v1538_v8, 0.0 }
 0x478   : > { %v1622_v28 = vmin.f32 %v1561_v32, 0.0  ;;  %v2700_v2 = vpop.eup %2699  ;;  %v1633_v7 = vmul.f32 1.442695, %v1621_v10  ;;  %vm1614_vm8 = vcmp.gt.f32.partialorder %v1561_v32, 0.0 }
 0x479   : > { %v2400_v35 = vadd.f32 -1.0, %v2700_v2 }
 0x47a   : > { %v2702_v34 = vpop.eup %2701  ;;  %v1635_v5 = vmul.f32 1.442695, %v1622_v28  ;;  %2703 = vpow2.f32 %v1633_v7 }
 0x47b   : > { %v2401_v43 = vadd.f32 -1.0, %v2702_v34  ;;  %v1649_v37 = vsel %vm1609_vm5, %v1535_v23, %v2400_v35  ;;  %v1706_v38 = vpop.f32.mrf.mxu0 }
 0x47c   : > { %2705 = vpow2.f32 %v1635_v5  ;;  %v1657_v11 = vmul.f32 %v1649_v37, %v3309_v22  ;;  %v1707_v25 = vadd.f32 %v1706_v38, %v3155_v14 }
 0x47d   : > { %v1650_v39 = vsel %vm1610_vm6, %v1558_v24, %v2401_v43  ;;  %v1729_v40 = vpop.f32.mrf.mxu1 }
 0x47e   : > { %v1658_v41 = vmul.f32 %v1650_v39, %v3309_v22  ;;  %v1730_v54 = vadd.f32 %v1729_v40, %v3155_v14  ;;  %v1665_v42 = vadd.f32 %v1657_v11, %v3320_v31  ;;  %v1789_v48 = vmin.f32 %v1707_v25, 0.0 }
 0x47f   : > { %vm1781_vm11 = vcmp.gt.f32.partialorder %v1707_v25, 0.0 }
 0x480   : > { %v1666_v45 = vadd.f32 %v1658_v41, %v3320_v31  ;;  %v2704_v46 = vpop.eup %2703  ;;  %1673 = vst [vmem:[%s3327_s24 + $0x40] sm:$0xff] %v1665_v42  ;;  %v1790_v53 = vmin.f32 %v1730_v54, 0.0  ;;  %v1797_v1 = vmul.f32 1.442695, %v1789_v48  ;;  %vm1782_vm12 = vcmp.gt.f32.partialorder %v1730_v54, 0.0 }
 0x481   : > { %v2404_v0 = vadd.f32 -1.0, %v2704_v46 }
 0x482   : > { %v2706_v50 = vpop.eup %2705  ;;  %1674 = vst [vmem:[%s3327_s24 + $0x48] sm:$0xff] %v1666_v45  ;;  %v1799_v4 = vmul.f32 1.442695, %v1790_v53  ;;  %2707 = vpow2.f32 %v1797_v1 }
 0x483   : > { %v2405_v57 = vadd.f32 -1.0, %v2706_v50  ;;  %v1653_v47 = vsel %vm1613_vm7, %v1538_v8, %v2404_v0  ;;  %v1709_v61 = vpop.f32.mrf.mxu0 }
 0x484   : > { %v1661_v49 = vmul.f32 %v1653_v47, %v3332_v44  ;;  %v1710_v51 = vadd.f32 %v1709_v61, %v3153_v13  ;;  %2709 = vpow2.f32 %v1799_v4 }
 0x485   : > { %v1654_v62 = vsel %vm1614_vm8, %v1561_v32, %v2405_v57  ;;  %v1732_v56 = vpop.f32.mrf.mxu1 }
 0x486   : > { %v1662_v3 = vmul.f32 %v1654_v62, %v3332_v44  ;;  %v1733_v6 = vadd.f32 %v1732_v56, %v3153_v13  ;;  %v1669_v55 = vadd.f32 %v1661_v49, %v3370_v12  ;;  %v1793_v18 = vmin.f32 %v1710_v51, 0.0 }
 0x487   : > { %vm1785_vm9 = vcmp.gt.f32.partialorder %v1710_v51, 0.0 }
 0x488   : > { %v1670_v19 = vadd.f32 %v1662_v3, %v3370_v12  ;;  %v1794_v58 = vmin.f32 %v1733_v6, 0.0  ;;  %1677 = vst [vmem:[%s3327_s24 + $0xc0] sm:$0xff] %v1669_v55  ;;  %v1805_v21 = vmul.f32 1.442695, %v1793_v18  ;;  %v2708_v9 = vpop.eup %2707  ;;  %vm1786_vm10 = vcmp.gt.f32.partialorder %v1733_v6, 0.0 }
 0x489   : > { %v2416_v30 = vadd.f32 -1.0, %v2708_v9 }
 0x48a   : > { %1678 = vst [vmem:[%s3327_s24 + $0xc8] sm:$0xff] %v1670_v19  ;;  %v1807_v23 = vmul.f32 1.442695, %v1794_v58  ;;  %2711 = vpow2.f32 %v1805_v21  ;;  %v2710_v24 = vpop.eup %2709 }
 0x48b   : > { %v2417_v8 = vadd.f32 -1.0, %v2710_v24  ;;  %v1821_v7 = vsel %vm1781_vm11, %v1707_v25, %v2416_v30 }
 0x48c   : > { %2713 = vpow2.f32 %v1807_v23 }
 0x48d   : > { %v1822_v35 = vsel %vm1782_vm12, %v1730_v54, %v2417_v8 }
 0x490   : > { %v2712_v26 = vpop.eup %2711 }
 0x491   : > { %v2420_v29 = vadd.f32 -1.0, %v2712_v26 }
 0x492   : > { %v2714_v27 = vpop.eup %2713 }
 0x493   : > { %v2421_v60 = vadd.f32 -1.0, %v2714_v27  ;;  %v1825_v15 = vsel %vm1785_vm9, %v1710_v51, %v2420_v29 }
 0x494   : > { %1843 = vmatpush.msra.mxu0 %v1825_v15 }
 0x495   : > { %v1826_v32 = vsel %vm1786_vm10, %v1733_v6, %v2421_v60 }
 0x496   : > { %v1580_v10 = vpop.f32.mrf.mxu2  ;;  %1866 = vmatpush.msra.mxu1 %v1826_v32  ;;  %1844 = vmatpush.msra.mxu0 %v1821_v7 }
 0x497   : > { %v1581_v28 = vadd.f32 %v1580_v10, %v3270_v36  ;;  %v1603_v2 = vpop.f32.mrf.mxu3  ;;  %2424 = vmatmul.msk.f32.vlgmr.msra.gmra.mxu0 %vm282_vm0, %v3503_v63 }
 0x498   : > { %v1604_v34 = vadd.f32 %v1603_v2, %v3270_v36  ;;  %1867 = vmatpush.msra.mxu1 %v1822_v35 }
 0x499   : > { %v1619_v5 = vmin.f32 %v1581_v28, 0.0  ;;  %2426 = vmatmul.msk.f32.vlgmr.msra.gmra.mxu1 %vm282_vm0, %v3503_v63  ;;  %vm1611_vm13 = vcmp.gt.f32.partialorder %v1581_v28, 0.0 }
 0x49a   : > { %v1620_v43 = vmin.f32 %v1604_v34, 0.0  ;;  %vm1612_vm14 = vcmp.gt.f32.partialorder %v1604_v34, 0.0 }
 0x49b   : > { %v1629_v37 = vmul.f32 1.442695, %v1619_v5 }
 0x49c   : > { %v1631_v38 = vmul.f32 1.442695, %v1620_v43 }
 0x49d   : > { %2715 = vpow2.f32 %v1629_v37 }
 0x49e   : > { %2717 = vpow2.f32 %v1631_v38  ;;  %v1583_v11 = vpop.f32.mrf.mxu2 }
 0x49f   : > { %v1584_v39 = vadd.f32 %v1583_v11, %v3289_v52  ;;  %v1606_v25 = vpop.f32.mrf.mxu3  ;;  %2425 = vmatmul.msk.f32.gmra.mxu0 %vm282_vm0, %v3517_v59 }
 0x4a0   : > { %v1607_v40 = vadd.f32 %v1606_v25, %v3289_v52 }
 0x4a1   : > { %v1623_v41 = vmin.f32 %v1584_v39, 0.0  ;;  %2427 = vmatmul.msk.f32.gmra.mxu1 %vm282_vm0, %v3517_v59  ;;  %vm1615_vm15 = vcmp.gt.f32.partialorder %v1584_v39, 0.0 }
 0x4a2   : > { %v1624_v54 = vmin.f32 %v1607_v40, 0.0  ;;  %vm1616_vm1 = vcmp.gt.f32.partialorder %v1607_v40, 0.0 }
 0x4a3   : > { %v2716_v42 = vpop.eup %2715  ;;  %v1637_v45 = vmul.f32 1.442695, %v1623_v41 }
 0x4a4   : > { %v2718_v46 = vpop.eup %2717  ;;  %v2402_v48 = vadd.f32 -1.0, %v2716_v42  ;;  %v1639_v50 = vmul.f32 1.442695, %v1624_v54 }
 0x4a5   : > { %v2403_v0 = vadd.f32 -1.0, %v2718_v46  ;;  %2719 = vpow2.f32 %v1637_v45 }
 0x4a6   : > { %v1651_v53 = vsel %vm1611_vm13, %v1581_v28, %v2402_v48  ;;  %2721 = vpow2.f32 %v1639_v50  ;;  %v1752_v57 = vpop.f32.mrf.mxu2 }
 0x4a7   : > { %v1659_v47 = vmul.f32 %v1651_v53, %v3309_v22  ;;  %v1652_v61 = vsel %vm1612_vm14, %v1604_v34, %v2403_v0  ;;  %v1753_v49 = vadd.f32 %v1752_v57, %v3155_v14  ;;  %v1775_v62 = vpop.f32.mrf.mxu3 }
 0x4a8   : > { %v1660_v1 = vmul.f32 %v1652_v61, %v3309_v22  ;;  %v1776_v51 = vadd.f32 %v1775_v62, %v3155_v14 }
 0x4a9   : > { %v1667_v56 = vadd.f32 %v1659_v47, %v3320_v31  ;;  %v1791_v6 = vmin.f32 %v1753_v49, 0.0  ;;  %vm1783_vm4 = vcmp.gt.f32.partialorder %v1753_v49, 0.0 }
 0x4aa   : > { %v1668_v3 = vadd.f32 %v1660_v1, %v3320_v31  ;;  %v1792_v19 = vmin.f32 %v1776_v51, 0.0  ;;  %vm1784_vm5 = vcmp.gt.f32.partialorder %v1776_v51, 0.0 }
 0x4ab   : > { %v2720_v4 = vpop.eup %2719  ;;  %1675 = vst [vmem:[%s3327_s24 + $0x50] sm:$0xff] %v1667_v56  ;;  %v1801_v24 = vmul.f32 1.442695, %v1791_v6 }
 0x4ac   : > { %v2722_v55 = vpop.eup %2721  ;;  %1676 = vst [vmem:[%s3327_s24 + $0x58] sm:$0xff] %v1668_v3  ;;  %v2406_v18 = vadd.f32 -1.0, %v2720_v4  ;;  %v1803_v30 = vmul.f32 1.442695, %v1792_v19 }
 0x4ad   : > { %v2407_v58 = vadd.f32 -1.0, %v2722_v55  ;;  %2723 = vpow2.f32 %v1801_v24 }
 0x4ae   : > { %v1655_v21 = vsel %vm1615_vm15, %v1584_v39, %v2406_v18  ;;  %v1755_v23 = vpop.f32.mrf.mxu2  ;;  %2725 = vpow2.f32 %v1803_v30 }
 0x4af   : > { %v1663_v14 = vmul.f32 %v1655_v21, %v3332_v44  ;;  %v1656_v9 = vsel %vm1616_vm1, %v1607_v40, %v2407_v58  ;;  %v1756_v26 = vadd.f32 %v1755_v23, %v3153_v13  ;;  %v1778_v27 = vpop.f32.mrf.mxu3 }
 0x4b0   : > { %v1664_v29 = vmul.f32 %v1656_v9, %v3332_v44  ;;  %v1779_v60 = vadd.f32 %v1778_v27, %v3153_v13 }
 0x4b1   : > { %v1671_v8 = vadd.f32 %v1663_v14, %v3370_v12  ;;  %v1795_v15 = vmin.f32 %v1756_v26, 0.0  ;;  %vm1787_vm2 = vcmp.gt.f32.partialorder %v1756_v26, 0.0 }
 0x4b2   : > { %v1672_v32 = vadd.f32 %v1664_v29, %v3370_v12  ;;  %v1796_v10 = vmin.f32 %v1779_v60, 0.0  ;;  %vm1788_vm3 = vcmp.gt.f32.partialorder %v1779_v60, 0.0 }
 0x4b3   : > { %1679 = vst [vmem:[%s3327_s24 + $0xd0] sm:$0xff] %v1671_v8  ;;  %v1809_v28 = vmul.f32 1.442695, %v1795_v15  ;;  %v2724_v7 = vpop.eup %2723 }
 0x4b4   : > { %1680 = vst [vmem:[%s3327_s24 + $0xd8] sm:$0xff] %v1672_v32  ;;  %v1811_v2 = vmul.f32 1.442695, %v1796_v10  ;;  %v2726_v34 = vpop.eup %2725  ;;  %v2418_v13 = vadd.f32 -1.0, %v2724_v7 }
 0x4b5   : > { %2727 = vpow2.f32 %v1809_v28  ;;  %v2419_v38 = vadd.f32 -1.0, %v2726_v34 }
 0x4b6   : > { %2729 = vpow2.f32 %v1811_v2  ;;  %v1823_v25 = vsel %vm1783_vm4, %v1753_v49, %v2418_v13 }
 0x4b7   : > { %v1824_v40 = vsel %vm1784_vm5, %v1776_v51, %v2419_v38 }
 0x4bb   : > { %v2728_v35 = vpop.eup %2727 }
 0x4bc   : > { %v2730_v5 = vpop.eup %2729  ;;  %v2422_v43 = vadd.f32 -1.0, %v2728_v35 }
 0x4bd   : > { %v2423_v37 = vadd.f32 -1.0, %v2730_v5 }
 0x4be   : > { %v1827_v11 = vsel %vm1787_vm2, %v1756_v26, %v2422_v43 }
 0x4bf   : > { %1889 = vmatpush.msra.mxu2 %v1827_v11  ;;  %v1828_v39 = vsel %vm1788_vm3, %v1779_v60, %v2423_v37 }
 0x4c0   : > { %1912 = vmatpush.msra.mxu3 %v1828_v39 }
 0x4c1   : > { %1890 = vmatpush.msra.mxu2 %v1823_v25 }
 0x4c2   : > { %1913 = vmatpush.msra.mxu3 %v1824_v40  ;;  %2428 = vmatmul.msk.f32.vlgmr.msra.gmra.mxu2 %vm282_vm0, %v3503_v63 }
 0x4c3   : > { %2430 = vmatmul.msk.f32.vlgmr.msra.gmra.mxu3 %vm282_vm0, %v3503_v63 }
 0x4ca   : > { %2429 = vmatmul.msk.f32.gmra.mxu2 %vm282_vm0, %v3517_v59 }
 0x4cb   : > { %2431 = vmatmul.msk.f32.gmra.mxu3 %vm282_vm0, %v3517_v59 }
 0x514   : > { %v1846_v41 = vpop.f32.mrf.mxu0 }
 0x515   : > { %v1847_v54 = vadd.f32 %v1846_v41, %v3199_v17 }
 0x516   : > { %v1869_v42 = vpop.f32.mrf.mxu1 }
 0x517   : > { %v1870_v45 = vadd.f32 %v1869_v42, %v3199_v17  ;;  %v1929_v46 = vmin.f32 %v1847_v54, 0.0  ;;  %vm1921_vm8 = vcmp.gt.f32.partialorder %v1847_v54, 0.0 }
 0x519   : > { %v1930_v48 = vmin.f32 %v1870_v45, 0.0  ;;  %v1937_v0 = vmul.f32 1.442695, %v1929_v46  ;;  %vm1922_vm9 = vcmp.gt.f32.partialorder %v1870_v45, 0.0 }
 0x51b   : > { %v1939_v63 = vmul.f32 1.442695, %v1930_v48  ;;  %2731 = vpow2.f32 %v1937_v0 }
 0x51c   : > { %v1849_v50 = vpop.f32.mrf.mxu0 }
 0x51d   : > { %v1850_v53 = vadd.f32 %v1849_v50, %v3197_v16  ;;  %2733 = vpow2.f32 %v1939_v63 }
 0x51e   : > { %v1872_v57 = vpop.f32.mrf.mxu1 }
 0x51f   : > { %v1873_v47 = vadd.f32 %v1872_v57, %v3197_v16  ;;  %v1933_v61 = vmin.f32 %v1850_v53, 0.0  ;;  %vm1925_vm6 = vcmp.gt.f32.partialorder %v1850_v53, 0.0 }
 0x521   : > { %v1934_v49 = vmin.f32 %v1873_v47, 0.0  ;;  %v1945_v59 = vmul.f32 1.442695, %v1933_v61  ;;  %v2732_v1 = vpop.eup %2731  ;;  %vm1926_vm7 = vcmp.gt.f32.partialorder %v1873_v47, 0.0 }
 0x522   : > { %v2432_v6 = vadd.f32 -1.0, %v2732_v1 }
 0x523   : > { %v1947_v62 = vmul.f32 1.442695, %v1934_v49  ;;  %2735 = vpow2.f32 %v1945_v59  ;;  %v2734_v51 = vpop.eup %2733 }
 0x524   : > { %v2433_v18 = vadd.f32 -1.0, %v2734_v51  ;;  %v1961_v21 = vsel %vm1921_vm8, %v1847_v54, %v2432_v6 }
 0x525   : > { %2737 = vpow2.f32 %v1947_v62 }
 0x526   : > { %v1962_v23 = vsel %vm1922_vm9, %v1870_v45, %v2433_v18 }
 0x529   : > { %v2736_v56 = vpop.eup %2735 }
 0x52a   : > { %v2436_v4 = vadd.f32 -1.0, %v2736_v56 }
 0x52b   : > { %v2738_v3 = vpop.eup %2737 }
 0x52c   : > { %v2437_v55 = vadd.f32 -1.0, %v2738_v3  ;;  %v1965_v19 = vsel %vm1925_vm6, %v1850_v53, %v2436_v4 }
 0x52d   : > { %1983 = vmatpush.msrb.mxu0 %v1965_v19 }
 0x52e   : > { %v1966_v58 = vsel %vm1926_vm7, %v1873_v47, %v2437_v55 }
 0x52f   : > { %2006 = vmatpush.msrb.mxu1 %v1966_v58  ;;  %1984 = vmatpush.msrb.mxu0 %v1961_v21 }
 0x530   : > { %2440 = vmatmul.msk.f32.vlgmr.msrb.gmra.mxu0 %vm282_vm0, %v3545_v33 }
 0x531   : > { %2007 = vmatpush.msrb.mxu1 %v1962_v23 }
 0x532   : > { %2442 = vmatmul.msk.f32.vlgmr.msrb.gmra.mxu1 %vm282_vm0, %v3545_v33 }
 0x538   : > { %2441 = vmatmul.msk.f32.gmra.mxu0 %vm282_vm0, %v3554_v20 }
 0x53a   : > { %2443 = vmatmul.msk.f32.gmra.mxu1 %vm282_vm0, %v3554_v20 }
 0x545   : > { %v1892_v14 = vpop.f32.mrf.mxu2 }
 0x546   : > { %v1893_v9 = vadd.f32 %v1892_v14, %v3199_v17  ;;  %v1915_v24 = vpop.f32.mrf.mxu3 }
 0x547   : > { %v1916_v26 = vadd.f32 %v1915_v24, %v3199_v17 }
 0x548   : > { %v1931_v27 = vmin.f32 %v1893_v9, 0.0  ;;  %vm1923_vm12 = vcmp.gt.f32.partialorder %v1893_v9, 0.0 }
 0x549   : > { %v1932_v29 = vmin.f32 %v1916_v26, 0.0  ;;  %vm1924_vm13 = vcmp.gt.f32.partialorder %v1916_v26, 0.0 }
 0x54a   : > { %v1941_v60 = vmul.f32 1.442695, %v1931_v27 }
 0x54b   : > { %v1943_v32 = vmul.f32 1.442695, %v1932_v29 }
 0x54c   : > { %2739 = vpow2.f32 %v1941_v60 }
 0x54d   : > { %v1895_v30 = vpop.f32.mrf.mxu2  ;;  %2741 = vpow2.f32 %v1943_v32 }
 0x54e   : > { %v1896_v8 = vadd.f32 %v1895_v30, %v3197_v16  ;;  %v1918_v15 = vpop.f32.mrf.mxu3 }
 0x54f   : > { %v1919_v10 = vadd.f32 %v1918_v15, %v3197_v16 }
 0x550   : > { %v1935_v28 = vmin.f32 %v1896_v8, 0.0  ;;  %vm1927_vm10 = vcmp.gt.f32.partialorder %v1896_v8, 0.0 }
 0x551   : > { %v1936_v2 = vmin.f32 %v1919_v10, 0.0  ;;  %vm1928_vm11 = vcmp.gt.f32.partialorder %v1919_v10, 0.0 }
 0x552   : > { %v1949_v7 = vmul.f32 1.442695, %v1935_v28  ;;  %v2740_v35 = vpop.eup %2739 }
 0x553   : > { %v1951_v34 = vmul.f32 1.442695, %v1936_v2  ;;  %v2742_v17 = vpop.eup %2741  ;;  %v2434_v37 = vadd.f32 -1.0, %v2740_v35 }
 0x554   : > { %2743 = vpow2.f32 %v1949_v7  ;;  %v2435_v11 = vadd.f32 -1.0, %v2742_v17 }
 0x555   : > { %2745 = vpow2.f32 %v1951_v34  ;;  %v1963_v25 = vsel %vm1923_vm12, %v1893_v9, %v2434_v37 }
 0x556   : > { %v1964_v40 = vsel %vm1924_vm13, %v1916_v26, %v2435_v11 }
 0x55a   : > { %v2744_v5 = vpop.eup %2743 }
 0x55b   : > { %v2746_v43 = vpop.eup %2745  ;;  %v2438_v13 = vadd.f32 -1.0, %v2744_v5 }
 0x55c   : > { %v2439_v38 = vadd.f32 -1.0, %v2746_v43 }
 0x55d   : > { %v1967_v39 = vsel %vm1927_vm10, %v1896_v8, %v2438_v13 }
 0x55e   : > { %2029 = vmatpush.msrb.mxu2 %v1967_v39  ;;  %v1968_v16 = vsel %vm1928_vm11, %v1919_v10, %v2439_v38 }
 0x55f   : > { %2052 = vmatpush.msrb.mxu3 %v1968_v16 }
 0x560   : > { %2030 = vmatpush.msrb.mxu2 %v1963_v25 }
 0x561   : > { %2053 = vmatpush.msrb.mxu3 %v1964_v40  ;;  %2444 = vmatmul.msk.f32.vlgmr.msrb.gmra.mxu2 %vm282_vm0, %v3545_v33 }
 0x562   : > { %2446 = vmatmul.msk.f32.vlgmr.msrb.gmra.mxu3 %vm282_vm0, %v3545_v33 }
 0x569   : > { %2445 = vmatmul.msk.f32.gmra.mxu2 %vm282_vm0, %v3554_v20 }
 0x56a   : > { %2447 = vmatmul.msk.f32.gmra.mxu3 %vm282_vm0, %v3554_v20 }
 0x5ad   : > { %v1986_v41 = vpop.f32.mrf.mxu0 }
 0x5ae   : > { %v1987_v54 = vadd.f32 %v1986_v41, %v3270_v36 }
 0x5af   : > { %v2009_v42 = vpop.f32.mrf.mxu1 }
 0x5b0   : > { %v2010_v45 = vadd.f32 %v2009_v42, %v3270_v36  ;;  %v2069_v46 = vmin.f32 %v1987_v54, 0.0  ;;  %vm2061_vm0 = vcmp.gt.f32.partialorder %v1987_v54, 0.0 }
 0x5b2   : > { %v2070_v48 = vmin.f32 %v2010_v45, 0.0  ;;  %v2077_v50 = vmul.f32 1.442695, %v2069_v46  ;;  %vm2062_vm14 = vcmp.gt.f32.partialorder %v2010_v45, 0.0 }
 0x5b4   : > { %v2079_v0 = vmul.f32 1.442695, %v2070_v48  ;;  %2747 = vpow2.f32 %v2077_v50 }
 0x5b5   : > { %v1989_v53 = vpop.f32.mrf.mxu0 }
 0x5b6   : > { %2749 = vpow2.f32 %v2079_v0  ;;  %v1990_v33 = vadd.f32 %v1989_v53, %v3289_v52 }
 0x5b7   : > { %v2012_v57 = vpop.f32.mrf.mxu1 }
 0x5b8   : > { %v2013_v63 = vadd.f32 %v2012_v57, %v3289_v52  ;;  %v2073_v47 = vmin.f32 %v1990_v33, 0.0  ;;  %vm2065_vm15 = vcmp.gt.f32.partialorder %v1990_v33, 0.0 }
 0x5ba   : > { %v2074_v20 = vmin.f32 %v2013_v63, 0.0  ;;  %v2748_v61 = vpop.eup %2747  ;;  %v2085_v49 = vmul.f32 1.442695, %v2073_v47  ;;  %vm2066_vm1 = vcmp.gt.f32.partialorder %v2013_v63, 0.0 }
 0x5bb   : > { %v2448_v62 = vadd.f32 -1.0, %v2748_v61 }
 0x5bc   : > { %v2750_v59 = vpop.eup %2749  ;;  %v2087_v1 = vmul.f32 1.442695, %v2074_v20  ;;  %2751 = vpow2.f32 %v2085_v49 }
 0x5bd   : > { %v2449_v51 = vadd.f32 -1.0, %v2750_v59  ;;  %v2101_v56 = vsel %vm2061_vm0, %v1987_v54, %v2448_v62 }
 0x5be   : > { %2753 = vpow2.f32 %v2087_v1  ;;  %v2109_v3 = vmul.f32 %v2101_v56, %v3309_v22 }
 0x5bf   : > { %v2102_v4 = vsel %vm2062_vm14, %v2010_v45, %v2449_v51 }
 0x5c0   : > { %v2110_v6 = vmul.f32 %v2102_v4, %v3309_v22  ;;  %v2117_v55 = vadd.f32 %v2109_v3, %v3320_v31 }
 0x5c2   : > { %v2118_v18 = vadd.f32 %v2110_v6, %v3320_v31  ;;  %v2752_v19 = vpop.eup %2751  ;;  %2125 = vst [vmem:[%s3327_s24 + $0x60] sm:$0xff] %v2117_v55 }
 0x5c3   : > { %v2452_v21 = vadd.f32 -1.0, %v2752_v19 }
 0x5c4   : > { %v2754_v58 = vpop.eup %2753  ;;  %2126 = vst [vmem:[%s3327_s24 + $0x68] sm:$0xff] %v2118_v18 }
 0x5c5   : > { %v2453_v23 = vadd.f32 -1.0, %v2754_v58  ;;  %v2105_v14 = vsel %vm2065_vm15, %v1990_v33, %v2452_v21 }
 0x5c6   : > { %v2113_v9 = vmul.f32 %v2105_v14, %v3332_v44 }
 0x5c7   : > { %v2106_v24 = vsel %vm2066_vm1, %v2013_v63, %v2453_v23 }
 0x5c8   : > { %v2114_v26 = vmul.f32 %v2106_v24, %v3332_v44  ;;  %v2121_v27 = vadd.f32 %v2113_v9, %v3370_v12 }
 0x5ca   : > { %v2122_v29 = vadd.f32 %v2114_v26, %v3370_v12  ;;  %2129 = vst [vmem:[%s3327_s24 + $0xe0] sm:$0xff] %v2121_v27 }
 0x5cc   : > { %2130 = vst [vmem:[%s3327_s24 + $0xe8] sm:$0xff] %v2122_v29 }
 0x5e4   : > { %v2032_v30 = vpop.f32.mrf.mxu2 }
 0x5e5   : > { %v2033_v60 = vadd.f32 %v2032_v30, %v3270_v36  ;;  %v2055_v8 = vpop.f32.mrf.mxu3 }
 0x5e6   : > { %v2056_v15 = vadd.f32 %v2055_v8, %v3270_v36 }
 0x5e7   : > { %v2071_v32 = vmin.f32 %v2033_v60, 0.0  ;;  %vm2063_vm2 = vcmp.gt.f32.partialorder %v2033_v60, 0.0 }
 0x5e8   : > { %v2072_v10 = vmin.f32 %v2056_v15, 0.0  ;;  %vm2064_vm3 = vcmp.gt.f32.partialorder %v2056_v15, 0.0 }
 0x5e9   : > { %v2081_v28 = vmul.f32 1.442695, %v2071_v32 }
 0x5ea   : > { %v2083_v2 = vmul.f32 1.442695, %v2072_v10 }
 0x5eb   : > { %2755 = vpow2.f32 %v2081_v28 }
 0x5ec   : > { %2757 = vpow2.f32 %v2083_v2  ;;  %v2035_v7 = vpop.f32.mrf.mxu2 }
 0x5ed   : > { %v2036_v34 = vadd.f32 %v2035_v7, %v3289_v52  ;;  %v2058_v35 = vpop.f32.mrf.mxu3 }
 0x5ee   : > { %v2059_v17 = vadd.f32 %v2058_v35, %v3289_v52 }
 0x5ef   : > { %v2075_v5 = vmin.f32 %v2036_v34, 0.0  ;;  %vm2067_vm4 = vcmp.gt.f32.partialorder %v2036_v34, 0.0 }
 0x5f0   : > { %v2076_v43 = vmin.f32 %v2059_v17, 0.0  ;;  %vm2068_vm5 = vcmp.gt.f32.partialorder %v2059_v17, 0.0 }
 0x5f1   : > { %v2756_v13 = vpop.eup %2755  ;;  %v2089_v37 = vmul.f32 1.442695, %v2075_v5 }
 0x5f2   : > { %v2758_v38 = vpop.eup %2757  ;;  %v2450_v36 = vadd.f32 -1.0, %v2756_v13  ;;  %v2091_v11 = vmul.f32 1.442695, %v2076_v43 }
 0x5f3   : > { %v2451_v39 = vadd.f32 -1.0, %v2758_v38  ;;  %2759 = vpow2.f32 %v2089_v37 }
 0x5f4   : > { %v2103_v16 = vsel %vm2063_vm2, %v2033_v60, %v2450_v36  ;;  %2761 = vpow2.f32 %v2091_v11 }
 0x5f5   : > { %v2111_v52 = vmul.f32 %v2103_v16, %v3309_v22  ;;  %v2104_v25 = vsel %vm2064_vm3, %v2056_v15, %v2451_v39 }
 0x5f6   : > { %v2112_v40 = vmul.f32 %v2104_v25, %v3309_v22 }
 0x5f7   : > { %v2119_v41 = vadd.f32 %v2111_v52, %v3320_v31 }
 0x5f8   : > { %v2120_v54 = vadd.f32 %v2112_v40, %v3320_v31 }
 0x5f9   : > { %v2760_v42 = vpop.eup %2759  ;;  %2127 = vst [vmem:[%s3327_s24 + $0x70] sm:$0xff] %v2119_v41 }
 0x5fa   : > { %v2762_v45 = vpop.eup %2761  ;;  %2128 = vst [vmem:[%s3327_s24 + $0x78] sm:$0xff] %v2120_v54  ;;  %v2454_v46 = vadd.f32 -1.0, %v2760_v42 }
 0x5fb   : > { %v2455_v48 = vadd.f32 -1.0, %v2762_v45 }
 0x5fc   : > { %v2107_v22 = vsel %vm2067_vm4, %v2036_v34, %v2454_v46 }
 0x5fd   : > { %v2115_v31 = vmul.f32 %v2107_v22, %v3332_v44  ;;  %v2108_v50 = vsel %vm2068_vm5, %v2059_v17, %v2455_v48 }
 0x5fe   : > { %v2116_v0 = vmul.f32 %v2108_v50, %v3332_v44 }
 0x5ff   : > { %v2123_v53 = vadd.f32 %v2115_v31, %v3370_v12 }
 0x600   : > { %v2124_v33 = vadd.f32 %v2116_v0, %v3370_v12 }
 0x601   : > { %2131 = vst [vmem:[%s3327_s24 + $0xf0] sm:$0xff] %v2123_v53 }
 0x602   : > { %2132 = vst [vmem:[%s3327_s24 + $0xf8] sm:$0xff] %v2124_v33 }
 0x603   : > { %2856 = shalt.err (!%p2853_p13)
}
 0x604   : > { %s2943_s11 = smov 2048   ;;  %s2944_s24 = smov 4096  }
 0x605   : > { %s2945_s8 = smov 128  }
 0x606   : > { %2468 = dma.vmem_to_hbm [thread:$0]  (%p3061_p3), %s2149_s4, 4096, %s2151_s25, %s2134_s27, %s2943_s11, %s2944_s24, %s2945_s8  }
 0x607 PF: > { %s3781_s26 = sld [smem:[#allocation11_spill]]  ;;  %p2485_p0 = scmp.ge.s32.totalorder %s2931_s22, 2 }
 0x609   : > { %p2479_p5 = pnand %p2485_p0, %p3030_p6 }
 0x60b   : > { %p2480_p7 = pneg %p2479_p5 }
 0x60d   : > { %s2165_s14 = sand.u32 1, %s3781_s26  }
 0x60e   : > { %s2166_s5 = scalar_lea.sflag [#allocation4], %s2165_s14 }
 0x60f   : > { %2898 = dma.done.wait (%p2480_p7), %s2166_s5, 4096  }
 0x610   : > { %2900 = vsyncadd (%p2480_p7), %s2166_s5, 4294963200  ;;  %s21_s22 = sadd.s32 1, %s2931_s22   ;;  %s3783_s18 = sld [smem:[#allocation12_spill]] }
 0x611   : > { %p18_p9 = scmp.ge.s32.totalorder %s21_s22, 6   ;;  %s3784_s20 = sld [smem:[#allocation14_spill]] }
 0x612   : > { %s3785_s7 = sld [smem:[#allocation16_spill]]  ;;  %s3786_s15 = smov %s2907_s16 }
 0x613   : > { %s3787_s16 = smov %s2911_s17  ;;  %s3788_s17 = smov %s3078_s2 }
 0x614   : > { %s3789_s19 = smov %s2927_s21  ;;  %20 = sbr.rel (!%p18_p9) target bundleno = 11 (0xb), region = 86 }
 0x618   : > { %s3790_s21 = smov %s3785_s7 }
 0x619   :  { %2172 = vsyncpa [#allocation3], 1 }
 0x61a   :  { %2174 = vsyncpa [#allocation3 + $0x1], 1 }
 0x61b   :  { %2175 = vsyncpa [#allocation6], 1 }
 0x61c   :  { %2176 = vsyncpa [#allocation4], 1 }
 0x61d   :  { %2178 = vsyncpa [#allocation4 + $0x1], 1 }

</bundles_post_ra>
